<compile_context>
chip_gen: v6e
topology: v6e:2x2x1
jax: 0.10.0
libtpu: 0.0.40
codegen_flags: <defaults>
</compile_context>

<pallas_src>
import functools
import numpy as np

import jax
import jax.numpy as jnp
from jax import lax
from jax.experimental import pallas as pl
from jax.experimental.pallas import tpu as pltpu

_LANE = 128
_MAX_ROW_TILE = 4096


def _round_up(v, m):
    return ((v + m - 1) // m) * m


# ---------------------------------------------------------------------------
# hardware introspection (wrapper-side)
# ---------------------------------------------------------------------------
def _tpu_generation():
    try:
        kind = jax.devices()[0].device_kind.lower()
    except Exception:
        return None
    for g in (7, 6, 5, 4):
        if ("v%d" % g) in kind:
            return g
    return None


def _vmem_capacity_bytes(gen):
    try:
        return int(pltpu.get_tpu_info().vmem_capacity_bytes)
    except Exception:
        return (64 if gen == 7 else 128) * 1024 * 1024


def _select_config(gen, safe):
    """-> (mm_dtype, acc_dtype, tri_max_l, vmem_limit, budget, min_steps)."""
    if safe or gen is None or gen == 4:
        mm_dtype, acc_dtype = jnp.bfloat16, jnp.float32
    elif gen in (5, 6):
        # v5e/v6e MXU has an int8 path; int32 accumulation is exact for 0/1.
        mm_dtype, acc_dtype = jnp.int8, jnp.int32
    else:  # gen >= 7: fp8 MXU (no int path); 0/1 masks are exact in e4m3.
        mm_dtype = getattr(jnp, "float8_e4m3fn", jnp.bfloat16)
        acc_dtype = jnp.float32
    # tri-vs-roll crossover: v5's MXU is ~4.7x slower than v6e/v7x, so the
    # O(L log L) roll scan wins at a much smaller pooling length there.
    tri_max_l = 1024 if gen == 5 else 2048
    cap = _vmem_capacity_bytes(gen)
    vmem_limit = min(cap * 3 // 4, 96 * 1024 * 1024)        # 96MiB v5e/v6e, 48MiB v7x
    budget = vmem_limit // 2 + 8 * 1024 * 1024              # ~56MiB / ~32MiB working set
    min_steps = 4 if gen == 7 else 2                        # >=2 steps per TC on v7x
    return mm_dtype, acc_dtype, tri_max_l, vmem_limit, budget, min_steps


def _pick_row_tile(R, Lp, itemsize, tri_bytes, budget, sub, min_steps):
    # ~2x double-buffered input + compute-dtype copy + mask/cumsum temporaries.
    per_row = Lp * (2 * itemsize + 48)
    rt = max(sub, (budget - tri_bytes) // per_row)
    rt = (rt // sub) * sub
    rt = min(rt, _MAX_ROW_TILE)
    rt = min(rt, _round_up(R, sub))                      # don't over-pad tiny inputs
    if min_steps > 1 and R > min_steps * sub:
        rt = min(rt, _round_up((R + min_steps - 1) // min_steps, sub))
    return max(sub, int(rt))


# ---------------------------------------------------------------------------
# tri (prefix-sum) matrix cache: tri[i, j] = 1 iff i <= j, built once per
# (Lp, dtype) directly in the narrow matmul dtype.
# ---------------------------------------------------------------------------
_TRI_CACHE = {}


def _get_tri(Lp, dtype):
    key = (Lp, jnp.dtype(dtype).name)
    tri = _TRI_CACHE.get(key)
    if tri is None:
        tri = jnp.asarray(np.triu(np.ones((Lp, Lp), np.float32)), dtype=dtype)
        _TRI_CACHE[key] = tri
    return tri


# ---------------------------------------------------------------------------
# kernel
# ---------------------------------------------------------------------------
def _lane_cumsum(v, Lp, col):
    """Inclusive prefix sum along lanes via a Hillis-Steele roll scan."""
    s = v
    zero = jnp.zeros_like(v)
    shift = 1
    while shift < Lp:
        rolled = pltpu.roll(s, shift=shift, axis=v.ndim - 1)
        s = s + jnp.where(col >= shift, rolled, zero)
        shift *= 2
    return s


def _kmax_kernel(x_ref, *rest, k: int, use_tri: bool, mm_dtype, acc_dtype):
    if use_tri:
        tri_ref, o_ref = rest
    else:
        (o_ref,) = rest

    in_dt = x_ref.dtype
    if in_dt == jnp.bfloat16:
        cdt = jnp.bfloat16                 # native bf16 VPU on v6e/v7x
    elif jnp.issubdtype(in_dt, jnp.floating):
        cdt = jnp.float32
    else:
        cdt = jnp.int32                    # exact integer compare/select path
    x = x_ref[...].astype(cdt)
    TR, Lp = x.shape

    neg = jnp.iinfo(jnp.int32).min if cdt == jnp.int32 else -jnp.inf
    neg_x = jnp.full(x.shape, neg, cdt)    # hoisted broadcasts
    zero_x = jnp.zeros_like(x)

    # ---- k-th largest value per row (duplicate-aware), fully unrolled ------
    # The first pass is UNMASKED so rows containing +inf are handled correctly.
    rem = jnp.full((TR, 1), k, jnp.int32)
    kth = jnp.full((TR, 1), neg, cdt)
    done = jnp.zeros((TR, 1), jnp.bool_)
    t = None
    for it in range(k):
        masked = x if it == 0 else jnp.where(x < t, x, neg_x)
        m = jnp.max(masked, axis=-1, keepdims=True)
        # TODO(synk): for k >= ~8 on the tri path, cnt (and the compaction
        # sums below for bf16 inputs) could be moved onto the MXU via a
        # ones-column matmul to offload the XLU; serial dependence of the
        # search loop makes the payoff small for typical small k.
        cnt = jnp.sum((x == m).astype(jnp.int32), axis=-1, keepdims=True)
        kth = jnp.where(done, kth, m)
        done_new = done | (cnt >= rem)
        rem = jnp.where(done, rem, rem - cnt)
        t = m if it == 0 else jnp.where(done, t, m)
        done = done_new

    # ---- select exactly k values >= kth, preserving original order ---------
    gt = x > kth
    eq = x == kth
    ge = gt | eq

    # ONE cumulative-sum pass for both masks.
    if use_tri:
        stacked = jnp.concatenate(
            [ge.astype(jnp.float32), eq.astype(jnp.float32)], axis=0
        ).astype(mm_dtype)                                   # (2*TR, Lp), 0/1 exact
        cs = jnp.dot(stacked, tri_ref[...],
                     preferred_element_type=acc_dtype)       # (2*TR, Lp)
        cum_ge = cs[:TR]
        eq_cs = cs[TR:]
    else:
        col = lax.broadcasted_iota(jnp.int32, (TR, Lp), 1)   # hoisted iota
        if Lp < 32768:
            # pack both masks into one scan: ge*2^16 + eq (exact for Lp < 2^15)
            packed = ge.astype(jnp.int32) * 65536 + eq.astype(jnp.int32)
            pcs = _lane_cumsum(packed, Lp, col)
            cum_ge = pcs >> 16
            eq_cs = pcs & 65535
        else:
            cum_ge = _lane_cumsum(ge.astype(jnp.int32), Lp, col)
            eq_cs = _lane_cumsum(eq.astype(jnp.int32), Lp, col)

    cum_gt = cum_ge - eq_cs                    # inclusive cumsum of (x > kth)
    c_gt = cum_gt[:, Lp - 1:Lp]                # total strictly-greater count
    k_rem = k - c_gt                           # #ties to keep (always >= 1)

    sel = gt | (eq & (eq_cs <= k_rem))         # exactly k True per row
    pos = cum_gt + jnp.minimum(eq_cs, k_rem)   # == inclusive cumsum of sel

    # compact the selected values into k columns (original order preserved),
    # assemble in registers and issue a single lane-dense store.
    cols = []
    for p in range(k):
        onehot = sel & (pos == (p + 1))
        cols.append(jnp.sum(jnp.where(onehot, x, zero_x), axis=-1, keepdims=True))
    out = jnp.concatenate(cols, axis=-1)       # (TR, k)
    o_ref[...] = out.astype(o_ref.dtype)


# ---------------------------------------------------------------------------
# wrapper
# ---------------------------------------------------------------------------
def _run_rows(x2, k, R, Lp, gen, safe):
    mm_dtype, acc_dtype, tri_max_l, vmem_limit, budget, min_steps = \
        _select_config(gen, safe)
    use_tri = Lp <= tri_max_l

    itemsize = jnp.dtype(x2.dtype).itemsize
    sub = max(8, 32 // max(1, itemsize))       # dtype-native sublane multiple

    tri_spec = None
    tri_buf_factor = 2
    if use_tri:
        if not safe:
            try:
                # constant-index operand: single-buffer it (default 2x is waste)
                tri_spec = pl.BlockSpec((Lp, Lp), lambda i: (0, 0),
                                        pipeline_mode=pl.Buffered(1))
                tri_buf_factor = 1
            except Exception:
                tri_spec = None
        if tri_spec is None:
            tri_spec = pl.BlockSpec((Lp, Lp), lambda i: (0, 0))
            tri_buf_factor = 2

    tri_bytes = (Lp * Lp * jnp.dtype(mm_dtype).itemsize * tri_buf_factor
                 if use_tri else 0)
    row_tile = _pick_row_tile(R, Lp, itemsize, tri_bytes, budget, sub, min_steps)

    Rp = _round_up(R, row_tile)
    if Rp != R:
        x2 = jnp.pad(x2, ((0, Rp - R), (0, 0)))   # junk rows, sliced off below

    in_specs = [pl.BlockSpec((row_tile, Lp), lambda i: (i, 0))]
    args = [x2]
    if use_tri:
        in_specs.append(tri_spec)
        args.append(_get_tri(Lp, mm_dtype))

    kernel = functools.partial(_kmax_kernel, k=k, use_tri=use_tri,
                               mm_dtype=mm_dtype, acc_dtype=acc_dtype)
    out2 = pl.pallas_call(
        kernel,
        out_shape=jax.ShapeDtypeStruct((Rp, k), x2.dtype),
        grid_spec=pltpu.PrefetchScalarGridSpec(
            num_scalar_prefetch=0,
            grid=(Rp // row_tile,),
            in_specs=in_specs,
            out_specs=pl.BlockSpec((row_tile, k), lambda i: (i, 0)),
        ),
        compiler_params=pltpu.CompilerParams(
            dimension_semantics=("parallel",),
            vmem_limit_bytes=int(vmem_limit),
        ),
    )(*args)
    return out2[:R]


def k_max_pooling(x, k, dim):
    ndim = x.ndim
    dim = dim % ndim
    perm = tuple(a for a in range(ndim) if a != dim) + (dim,)
    inv_perm = tuple(int(i) for i in np.argsort(perm))

    xt = jnp.transpose(x, perm)
    lead = xt.shape[:-1]
    L = xt.shape[-1]
    if k > L:
        raise ValueError("k must be <= size of the pooling axis")
    R = int(np.prod(lead)) if lead else 1
    x2 = xt.reshape(R, L)

    # lane-align L; padding value is inert for top-k selection
    Lp = _round_up(L, _LANE)
    if Lp != L:
        if jnp.issubdtype(x.dtype, jnp.floating):
            pad_val = -jnp.inf
        elif x.dtype == jnp.bool_:
            pad_val = False
        else:
            pad_val = jnp.iinfo(x.dtype).min
        x2 = jnp.pad(x2, ((0, 0), (0, Lp - L)), constant_values=pad_val)

    gen = _tpu_generation()
    try:
        out2 = _run_rows(x2, k, R, Lp, gen, safe=False)
    except Exception:
        # conservative fallback (bf16 matmul operands, default buffering) in
        # case the generation-specific fast path fails to lower on this chip
        out2 = _run_rows(x2, k, R, Lp, gen, safe=True)

    out = out2.reshape(lead + (k,))
    return jnp.transpose(out, inv_perm)


def k_max_pooling_ref(x, k, dim):
    # pure-JAX reference replicating the PyTorch module
    dim = dim % x.ndim
    xm = jnp.moveaxis(x, dim, -1)
    _, idx = lax.top_k(xm, k)
    idx = jnp.sort(idx, axis=-1)
    out = jnp.take_along_axis(xm, idx, axis=-1)
    return jnp.moveaxis(out, -1, dim)


if __name__ == "__main__":
    key = jax.random.PRNGKey(0)
    k = 3
    ok = True

    # NCHW-style conv activation; pool over spatial / channel axes.
    x = jax.random.normal(key, (2, 4, 16, 16), jnp.float32)
    for dim in (3, 2, 1):
        y = jax.block_until_ready(k_max_pooling(x, k, dim))
        y_ref = k_max_pooling_ref(x, k, dim)
        ok &= bool(jnp.array_equal(y, y_ref))
        ok &= (y.shape == y_ref.shape)

    # +inf handling (first pass of the kth-value search is unmasked)
    x_inf = x.at[0, 1, 3, 2].set(jnp.inf).at[0, 1, 3, 9].set(jnp.inf)
    y = jax.block_until_ready(k_max_pooling(x_inf, k, 3))
    ok &= bool(jnp.array_equal(y, k_max_pooling_ref(x_inf, k, 3)))

    # exact integer path (|x| > 2^24 would be corrupted by an f32 round trip)
    xi = jax.random.randint(jax.random.PRNGKey(1), (2, 4, 16, 16),
                            -(2 ** 30), 2 ** 30, jnp.int32)
    y = jax.block_until_ready(k_max_pooling(xi, k, 3))
    ok &= bool(jnp.array_equal(y, k_max_pooling_ref(xi, k, 3)))

    # bf16 stays bf16 in the compare/select passes (distinct values per slice)
    xb = jnp.argsort(jax.random.uniform(jax.random.PRNGKey(2), (2, 4, 16, 16)),
                     axis=2).astype(jnp.bfloat16)
    y = jax.block_until_ready(k_max_pooling(xb, k, 2))
    ok &= bool(jnp.array_equal(y, k_max_pooling_ref(xb, k, 2)))

    # TODO(synk): tie-break among duplicates of the k-th value and NaN handling
    # follow the duplicate-aware selection here (earliest occurrences), not
    # torch.topk's backend-dependent order.
    if ok:
        print("KERNEL_OK")
</pallas_src>

<mosaic_0001>
module attributes {stable_mosaic.version = 11 : i64} {
  func.func @_kmax_kernel(%arg0: i32, %arg1: memref<64x128xf32, #tpu.memory_space<vmem>>, %arg2: memref<128x128xbf16, #tpu.memory_space<vmem>>, %arg3: memref<64x3xf32, #tpu.memory_space<vmem>>) attributes {dimension_semantics = [#tpu.dimension_semantics<parallel>], iteration_bounds = array<i64: 2>, scalar_prefetch = 0 : i64, scratch_operands = 0 : i64, tpu.core_type = #tpu.core_type<tc>, window_params = [{transform_indices = @transform_0, window_bounds = array<i64: 64, 128>}, {pipeline_mode = #tpu.pipeline_mode<synchronous>, transform_indices = @transform_1, window_bounds = array<i64: 128, 128>}, {transform_indices = @transform_2, window_bounds = array<i64: 64, 3>}]} {
    %c0 = arith.constant 0 : index
    %c0_0 = arith.constant 0 : index
    %0 = vector.load %arg1[%c0, %c0_0] : memref<64x128xf32, #tpu.memory_space<vmem>>, vector<64x128xf32>
    %cst = arith.constant 0xFF800000 : f32
    %1 = vector.broadcast %cst : f32 to vector<64x128xf32>
    %cst_1 = arith.constant 0.000000e+00 : f32
    %2 = vector.broadcast %cst_1 : f32 to vector<64x128xf32>
    %c3_i32 = arith.constant 3 : i32
    %3 = vector.broadcast %c3_i32 : i32 to vector<64x1xi32>
    %cst_2 = arith.constant 0xFF800000 : f32
    %4 = vector.broadcast %cst_2 : f32 to vector<64x1xf32>
    %false = arith.constant false
    %5 = vector.broadcast %false : i1 to vector<64x1xi1>
    %cst_3 = arith.constant dense<0xFF800000> : vector<64xf32>
    %6 = vector.multi_reduction <maximumf>, %0, %cst_3 [1] : vector<64x128xf32> to vector<64xf32>
    %7 = vector.shape_cast %6 : vector<64xf32> to vector<64x1xf32>
    %8 = vector.broadcast %7 : vector<64x1xf32> to vector<64x128xf32>
    %9 = arith.cmpf oeq, %0, %8 : vector<64x128xf32>
    %10 = arith.extui %9 : vector<64x128xi1> to vector<64x128xi32>
    %cst_4 = arith.constant dense<0> : vector<64xi32>
    %11 = vector.multi_reduction <add>, %10, %cst_4 [1] : vector<64x128xi32> to vector<64xi32>
    %12 = vector.shape_cast %11 : vector<64xi32> to vector<64x1xi32>
    %13 = arith.select %5, %4, %7 : vector<64x1xi1>, vector<64x1xf32>
    %14 = arith.cmpi sge, %12, %3 : vector<64x1xi32>
    %15 = arith.ori %5, %14 : vector<64x1xi1>
    %16 = arith.subi %3, %12 : vector<64x1xi32>
    %17 = arith.select %5, %3, %16 : vector<64x1xi1>, vector<64x1xi32>
    %18 = vector.broadcast %7 : vector<64x1xf32> to vector<64x128xf32>
    %19 = arith.cmpf olt, %0, %18 : vector<64x128xf32>
    %20 = arith.select %19, %0, %1 : vector<64x128xi1>, vector<64x128xf32>
    %cst_5 = arith.constant dense<0xFF800000> : vector<64xf32>
    %21 = vector.multi_reduction <maximumf>, %20, %cst_5 [1] : vector<64x128xf32> to vector<64xf32>
    %22 = vector.shape_cast %21 : vector<64xf32> to vector<64x1xf32>
    %23 = vector.broadcast %22 : vector<64x1xf32> to vector<64x128xf32>
    %24 = arith.cmpf oeq, %0, %23 : vector<64x128xf32>
    %25 = arith.extui %24 : vector<64x128xi1> to vector<64x128xi32>
    %cst_6 = arith.constant dense<0> : vector<64xi32>
    %26 = vector.multi_reduction <add>, %25, %cst_6 [1] : vector<64x128xi32> to vector<64xi32>
    %27 = vector.shape_cast %26 : vector<64xi32> to vector<64x1xi32>
    %28 = arith.select %15, %13, %22 : vector<64x1xi1>, vector<64x1xf32>
    %29 = arith.cmpi sge, %27, %17 : vector<64x1xi32>
    %30 = arith.ori %15, %29 : vector<64x1xi1>
    %31 = arith.select %15, %7, %22 : vector<64x1xi1>, vector<64x1xf32>
    %32 = vector.broadcast %31 : vector<64x1xf32> to vector<64x128xf32>
    %33 = arith.cmpf olt, %0, %32 : vector<64x128xf32>
    %34 = arith.select %33, %0, %1 : vector<64x128xi1>, vector<64x128xf32>
    %cst_7 = arith.constant dense<0xFF800000> : vector<64xf32>
    %35 = vector.multi_reduction <maximumf>, %34, %cst_7 [1] : vector<64x128xf32> to vector<64xf32>
    %36 = vector.shape_cast %35 : vector<64xf32> to vector<64x1xf32>
    %37 = arith.select %30, %28, %36 : vector<64x1xi1>, vector<64x1xf32>
    %38 = vector.broadcast %37 : vector<64x1xf32> to vector<64x128xf32>
    %39 = arith.cmpf ogt, %0, %38 : vector<64x128xf32>
    %40 = vector.broadcast %37 : vector<64x1xf32> to vector<64x128xf32>
    %41 = arith.cmpf oeq, %0, %40 : vector<64x128xf32>
    %42 = arith.ori %39, %41 : vector<64x128xi1>
    %43 = arith.extui %42 : vector<64x128xi1> to vector<64x128xi32>
    %44 = arith.sitofp %43 : vector<64x128xi32> to vector<64x128xf32>
    %45 = arith.extui %41 : vector<64x128xi1> to vector<64x128xi32>
    %46 = arith.sitofp %45 : vector<64x128xi32> to vector<64x128xf32>
    %47 = tpu.concatenate %44, %46 in 0 : vector<64x128xf32>, vector<64x128xf32> -> vector<128x128xf32>
    %48 = arith.truncf %47 : vector<128x128xf32> to vector<128x128xbf16>
    %c0_8 = arith.constant 0 : index
    %c0_9 = arith.constant 0 : index
    %49 = vector.load %arg2[%c0_8, %c0_9] : memref<128x128xbf16, #tpu.memory_space<vmem>>, vector<128x128xbf16>
    %cst_10 = arith.constant dense<0.000000e+00> : vector<128x128xf32>
    %50 = tpu.matmul %48, %49, %cst_10 {dimension_numbers = #tpu.dot_dimension_numbers<[1], [0], [0], [1], [0, 0, 1, 1], [], []>} : vector<128x128xbf16>, vector<128x128xbf16>, vector<128x128xf32> -> vector<128x128xf32>
    %51 = vector.extract_strided_slice %50 {offsets = [0, 0], sizes = [64, 128], strides = [1, 1]} : vector<128x128xf32> to vector<64x128xf32>
    %52 = vector.extract_strided_slice %50 {offsets = [64, 0], sizes = [64, 128], strides = [1, 1]} : vector<128x128xf32> to vector<64x128xf32>
    %53 = arith.subf %51, %52 : vector<64x128xf32>
    %54 = vector.extract_strided_slice %53 {offsets = [0, 127], sizes = [64, 1], strides = [1, 1]} : vector<64x128xf32> to vector<64x1xf32>
    %cst_11 = arith.constant 3.000000e+00 : f32
    %55 = vector.broadcast %cst_11 : f32 to vector<64x1xf32>
    %56 = arith.subf %55, %54 : vector<64x1xf32>
    %57 = vector.broadcast %56 : vector<64x1xf32> to vector<64x128xf32>
    %58 = arith.cmpf ole, %52, %57 : vector<64x128xf32>
    %59 = arith.andi %41, %58 : vector<64x128xi1>
    %60 = arith.ori %39, %59 : vector<64x128xi1>
    %61 = vector.broadcast %56 : vector<64x1xf32> to vector<64x128xf32>
    %62 = arith.minimumf %52, %61 : vector<64x128xf32>
    %63 = arith.addf %53, %62 : vector<64x128xf32>
    %cst_12 = arith.constant 1.000000e+00 : f32
    %64 = vector.broadcast %cst_12 : f32 to vector<64x128xf32>
    %65 = arith.cmpf oeq, %63, %64 : vector<64x128xf32>
    %66 = arith.andi %60, %65 : vector<64x128xi1>
    %67 = arith.select %66, %0, %2 : vector<64x128xi1>, vector<64x128xf32>
    %cst_13 = arith.constant dense<0.000000e+00> : vector<64xf32>
    %68 = vector.multi_reduction <add>, %67, %cst_13 [1] : vector<64x128xf32> to vector<64xf32>
    %69 = vector.shape_cast %68 : vector<64xf32> to vector<64x1xf32>
    %cst_14 = arith.constant 2.000000e+00 : f32
    %70 = vector.broadcast %cst_14 : f32 to vector<64x128xf32>
    %71 = arith.cmpf oeq, %63, %70 : vector<64x128xf32>
    %72 = arith.andi %60, %71 : vector<64x128xi1>
    %73 = arith.select %72, %0, %2 : vector<64x128xi1>, vector<64x128xf32>
    %cst_15 = arith.constant dense<0.000000e+00> : vector<64xf32>
    %74 = vector.multi_reduction <add>, %73, %cst_15 [1] : vector<64x128xf32> to vector<64xf32>
    %75 = vector.shape_cast %74 : vector<64xf32> to vector<64x1xf32>
    %cst_16 = arith.constant 3.000000e+00 : f32
    %76 = vector.broadcast %cst_16 : f32 to vector<64x128xf32>
    %77 = arith.cmpf oeq, %63, %76 : vector<64x128xf32>
    %78 = arith.andi %60, %77 : vector<64x128xi1>
    %79 = arith.select %78, %0, %2 : vector<64x128xi1>, vector<64x128xf32>
    %cst_17 = arith.constant dense<0.000000e+00> : vector<64xf32>
    %80 = vector.multi_reduction <add>, %79, %cst_17 [1] : vector<64x128xf32> to vector<64xf32>
    %81 = vector.shape_cast %80 : vector<64xf32> to vector<64x1xf32>
    %82 = tpu.concatenate %69, %75, %81 in 1 : vector<64x1xf32>, vector<64x1xf32>, vector<64x1xf32> -> vector<64x3xf32>
    %c0_18 = arith.constant 0 : index
    %c0_19 = arith.constant 0 : index
    %83 = vector.load %arg3[%c0_18, %c0_19] : memref<64x3xf32, #tpu.memory_space<vmem>>, vector<64x3xf32>
    tpu.vector_store %arg3[%c0_18, %c0_19], %82 {strides = array<i32>} : memref<64x3xf32, #tpu.memory_space<vmem>>, vector<64x3xf32>,
    return
  }
  func.func @transform_0(%arg0: i32) -> (i32, i32) {
    %c0_i32 = arith.constant 0 : i32
    %c0_i32_0 = arith.constant 0 : i32
    return %arg0, %c0_i32 : i32, i32
  }
  func.func @transform_1(%arg0: i32) -> (i32, i32) {
    %c0_i32 = arith.constant 0 : i32
    %c0_i32_0 = arith.constant 0 : i32
    %c0_i32_1 = arith.constant 0 : i32
    return %c0_i32, %c0_i32_0 : i32, i32
  }
  func.func @transform_2(%arg0: i32) -> (i32, i32) {
    %c0_i32 = arith.constant 0 : i32
    %c0_i32_0 = arith.constant 0 : i32
    return %arg0, %c0_i32 : i32, i32
  }
}

module attributes {stable_mosaic.version = 11 : i64} {
  func.func @_kmax_kernel(%arg0: i32, %arg1: memref<64x128xf32, #tpu.memory_space<vmem>>, %arg2: memref<128x128xbf16, #tpu.memory_space<vmem>>, %arg3: memref<64x3xf32, #tpu.memory_space<vmem>>) attributes {dimension_semantics = [#tpu.dimension_semantics<parallel>], iteration_bounds = array<i64: 2>, scalar_prefetch = 0 : i64, scratch_operands = 0 : i64, tpu.core_type = #tpu.core_type<tc>, window_params = [{transform_indices = @transform_0, window_bounds = array<i64: 64, 128>}, {pipeline_mode = #tpu.pipeline_mode<synchronous>, transform_indices = @transform_1, window_bounds = array<i64: 128, 128>}, {transform_indices = @transform_2, window_bounds = array<i64: 64, 3>}]} {
    %c0 = arith.constant 0 : index
    %c0_0 = arith.constant 0 : index
    %0 = vector.load %arg1[%c0, %c0_0] : memref<64x128xf32, #tpu.memory_space<vmem>>, vector<64x128xf32>
    %cst = arith.constant 0xFF800000 : f32
    %1 = vector.broadcast %cst : f32 to vector<64x128xf32>
    %cst_1 = arith.constant 0.000000e+00 : f32
    %2 = vector.broadcast %cst_1 : f32 to vector<64x128xf32>
    %c3_i32 = arith.constant 3 : i32
    %3 = vector.broadcast %c3_i32 : i32 to vector<64x1xi32>
    %cst_2 = arith.constant 0xFF800000 : f32
    %4 = vector.broadcast %cst_2 : f32 to vector<64x1xf32>
    %false = arith.constant false
    %5 = vector.broadcast %false : i1 to vector<64x1xi1>
    %cst_3 = arith.constant dense<0xFF800000> : vector<64xf32>
    %6 = vector.multi_reduction <maximumf>, %0, %cst_3 [1] : vector<64x128xf32> to vector<64xf32>
    %7 = vector.shape_cast %6 : vector<64xf32> to vector<64x1xf32>
    %8 = vector.broadcast %7 : vector<64x1xf32> to vector<64x128xf32>
    %9 = arith.cmpf oeq, %0, %8 : vector<64x128xf32>
    %10 = arith.extui %9 : vector<64x128xi1> to vector<64x128xi32>
    %cst_4 = arith.constant dense<0> : vector<64xi32>
    %11 = vector.multi_reduction <add>, %10, %cst_4 [1] : vector<64x128xi32> to vector<64xi32>
    %12 = vector.shape_cast %11 : vector<64xi32> to vector<64x1xi32>
    %13 = arith.select %5, %4, %7 : vector<64x1xi1>, vector<64x1xf32>
    %14 = arith.cmpi sge, %12, %3 : vector<64x1xi32>
    %15 = arith.ori %5, %14 : vector<64x1xi1>
    %16 = arith.subi %3, %12 : vector<64x1xi32>
    %17 = arith.select %5, %3, %16 : vector<64x1xi1>, vector<64x1xi32>
    %18 = vector.broadcast %7 : vector<64x1xf32> to vector<64x128xf32>
    %19 = arith.cmpf olt, %0, %18 : vector<64x128xf32>
    %20 = arith.select %19, %0, %1 : vector<64x128xi1>, vector<64x128xf32>
    %cst_5 = arith.constant dense<0xFF800000> : vector<64xf32>
    %21 = vector.multi_reduction <maximumf>, %20, %cst_5 [1] : vector<64x128xf32> to vector<64xf32>
    %22 = vector.shape_cast %21 : vector<64xf32> to vector<64x1xf32>
    %23 = vector.broadcast %22 : vector<64x1xf32> to vector<64x128xf32>
    %24 = arith.cmpf oeq, %0, %23 : vector<64x128xf32>
    %25 = arith.extui %24 : vector<64x128xi1> to vector<64x128xi32>
    %cst_6 = arith.constant dense<0> : vector<64xi32>
    %26 = vector.multi_reduction <add>, %25, %cst_6 [1] : vector<64x128xi32> to vector<64xi32>
    %27 = vector.shape_cast %26 : vector<64xi32> to vector<64x1xi32>
    %28 = arith.select %15, %13, %22 : vector<64x1xi1>, vector<64x1xf32>
    %29 = arith.cmpi sge, %27, %17 : vector<64x1xi32>
    %30 = arith.ori %15, %29 : vector<64x1xi1>
    %31 = arith.select %15, %7, %22 : vector<64x1xi1>, vector<64x1xf32>
    %32 = vector.broadcast %31 : vector<64x1xf32> to vector<64x128xf32>
    %33 = arith.cmpf olt, %0, %32 : vector<64x128xf32>
    %34 = arith.select %33, %0, %1 : vector<64x128xi1>, vector<64x128xf32>
    %cst_7 = arith.constant dense<0xFF800000> : vector<64xf32>
    %35 = vector.multi_reduction <maximumf>, %34, %cst_7 [1] : vector<64x128xf32> to vector<64xf32>
    %36 = vector.shape_cast %35 : vector<64xf32> to vector<64x1xf32>
    %37 = arith.select %30, %28, %36 : vector<64x1xi1>, vector<64x1xf32>
    %38 = vector.broadcast %37 : vector<64x1xf32> to vector<64x128xf32>
    %39 = arith.cmpf ogt, %0, %38 : vector<64x128xf32>
    %40 = vector.broadcast %37 : vector<64x1xf32> to vector<64x128xf32>
    %41 = arith.cmpf oeq, %0, %40 : vector<64x128xf32>
    %42 = arith.ori %39, %41 : vector<64x128xi1>
    %43 = arith.extui %42 : vector<64x128xi1> to vector<64x128xi32>
    %44 = arith.sitofp %43 : vector<64x128xi32> to vector<64x128xf32>
    %45 = arith.extui %41 : vector<64x128xi1> to vector<64x128xi32>
    %46 = arith.sitofp %45 : vector<64x128xi32> to vector<64x128xf32>
    %47 = tpu.concatenate %44, %46 in 0 : vector<64x128xf32>, vector<64x128xf32> -> vector<128x128xf32>
    %48 = arith.truncf %47 : vector<128x128xf32> to vector<128x128xbf16>
    %c0_8 = arith.constant 0 : index
    %c0_9 = arith.constant 0 : index
    %49 = vector.load %arg2[%c0_8, %c0_9] : memref<128x128xbf16, #tpu.memory_space<vmem>>, vector<128x128xbf16>
    %cst_10 = arith.constant dense<0.000000e+00> : vector<128x128xf32>
    %50 = tpu.matmul %48, %49, %cst_10 {dimension_numbers = #tpu.dot_dimension_numbers<[1], [0], [0], [1], [0, 0, 1, 1], [], []>} : vector<128x128xbf16>, vector<128x128xbf16>, vector<128x128xf32> -> vector<128x128xf32>
    %51 = vector.extract_strided_slice %50 {offsets = [0, 0], sizes = [64, 128], strides = [1, 1]} : vector<128x128xf32> to vector<64x128xf32>
    %52 = vector.extract_strided_slice %50 {offsets = [64, 0], sizes = [64, 128], strides = [1, 1]} : vector<128x128xf32> to vector<64x128xf32>
    %53 = arith.subf %51, %52 : vector<64x128xf32>
    %54 = vector.extract_strided_slice %53 {offsets = [0, 127], sizes = [64, 1], strides = [1, 1]} : vector<64x128xf32> to vector<64x1xf32>
    %cst_11 = arith.constant 3.000000e+00 : f32
    %55 = vector.broadcast %cst_11 : f32 to vector<64x1xf32>
    %56 = arith.subf %55, %54 : vector<64x1xf32>
    %57 = vector.broadcast %56 : vector<64x1xf32> to vector<64x128xf32>
    %58 = arith.cmpf ole, %52, %57 : vector<64x128xf32>
    %59 = arith.andi %41, %58 : vector<64x128xi1>
    %60 = arith.ori %39, %59 : vector<64x128xi1>
    %61 = vector.broadcast %56 : vector<64x1xf32> to vector<64x128xf32>
    %62 = arith.minimumf %52, %61 : vector<64x128xf32>
    %63 = arith.addf %53, %62 : vector<64x128xf32>
    %cst_12 = arith.constant 1.000000e+00 : f32
    %64 = vector.broadcast %cst_12 : f32 to vector<64x128xf32>
    %65 = arith.cmpf oeq, %63, %64 : vector<64x128xf32>
    %66 = arith.andi %60, %65 : vector<64x128xi1>
    %67 = arith.select %66, %0, %2 : vector<64x128xi1>, vector<64x128xf32>
    %cst_13 = arith.constant dense<0.000000e+00> : vector<64xf32>
    %68 = vector.multi_reduction <add>, %67, %cst_13 [1] : vector<64x128xf32> to vector<64xf32>
    %69 = vector.shape_cast %68 : vector<64xf32> to vector<64x1xf32>
    %cst_14 = arith.constant 2.000000e+00 : f32
    %70 = vector.broadcast %cst_14 : f32 to vector<64x128xf32>
    %71 = arith.cmpf oeq, %63, %70 : vector<64x128xf32>
    %72 = arith.andi %60, %71 : vector<64x128xi1>
    %73 = arith.select %72, %0, %2 : vector<64x128xi1>, vector<64x128xf32>
    %cst_15 = arith.constant dense<0.000000e+00> : vector<64xf32>
    %74 = vector.multi_reduction <add>, %73, %cst_15 [1] : vector<64x128xf32> to vector<64xf32>
    %75 = vector.shape_cast %74 : vector<64xf32> to vector<64x1xf32>
    %cst_16 = arith.constant 3.000000e+00 : f32
    %76 = vector.broadcast %cst_16 : f32 to vector<64x128xf32>
    %77 = arith.cmpf oeq, %63, %76 : vector<64x128xf32>
    %78 = arith.andi %60, %77 : vector<64x128xi1>
    %79 = arith.select %78, %0, %2 : vector<64x128xi1>, vector<64x128xf32>
    %cst_17 = arith.constant dense<0.000000e+00> : vector<64xf32>
    %80 = vector.multi_reduction <add>, %79, %cst_17 [1] : vector<64x128xf32> to vector<64xf32>
    %81 = vector.shape_cast %80 : vector<64xf32> to vector<64x1xf32>
    %82 = tpu.concatenate %69, %75, %81 in 1 : vector<64x1xf32>, vector<64x1xf32>, vector<64x1xf32> -> vector<64x3xf32>
    %c0_18 = arith.constant 0 : index
    %c0_19 = arith.constant 0 : index
    %83 = vector.load %arg3[%c0_18, %c0_19] : memref<64x3xf32, #tpu.memory_space<vmem>>, vector<64x3xf32>
    tpu.vector_store %arg3[%c0_18, %c0_19], %82 {strides = array<i32>} : memref<64x3xf32, #tpu.memory_space<vmem>>, vector<64x3xf32>,
    return
  }
  func.func @transform_0(%arg0: i32) -> (i32, i32) {
    %c0_i32 = arith.constant 0 : i32
    %c0_i32_0 = arith.constant 0 : i32
    return %arg0, %c0_i32 : i32, i32
  }
  func.func @transform_1(%arg0: i32) -> (i32, i32) {
    %c0_i32 = arith.constant 0 : i32
    %c0_i32_0 = arith.constant 0 : i32
    %c0_i32_1 = arith.constant 0 : i32
    return %c0_i32, %c0_i32_0 : i32, i32
  }
  func.func @transform_2(%arg0: i32) -> (i32, i32) {
    %c0_i32 = arith.constant 0 : i32
    %c0_i32_0 = arith.constant 0 : i32
    return %arg0, %c0_i32 : i32, i32
  }
}

</mosaic_0001>

<bundles_post_ra>
// kernel: tpu_custom_call.1
= control target key start
LH: loop header
LB: loop body
LE: loop exit
PB: predicated region body
PF: predicated region fallthrough
CT: control target
= control target key end

     0   :  { %7 = vsyncpa [#allocation3], 0  ;;  %s2223_s0 = inlined_call_operand.hbm [shape: f32[128,128], index: 0, kind: input, shape index: {}]   ;;  %s2224_s1 = inlined_call_operand.hbm [shape: bf16[128,128], index: 1, kind: input, shape index: {}]   ;;  %s2225_s2 = inlined_call_operand.vmem [shape: f32[128,3], index: 2, kind: output, shape index: {}]  }
   0x1   :  { %9 = vsyncpa [#allocation3 + $0x1], 0 }
   0x2   :  { %10 = vsyncpa [#allocation5], 0  ;;  %s1400_s9 = smov 0   ;;  %s1402_s10 = smov 0  }
   0x3   :  { %s1404_s11 = smov 0   ;;  %s1406_s12 = smov 0  }
   0x4 LB: > { %s1087_s13 = sadd.s32 4294967295, %s1374_s12   ;;  %p36_p0 = scmp.ne.s32.totalorder %s1366_s10, %s1362_s9  ;;  %s1374_s12 = sphi %s1406_s12, %s2307_s12   ;;  %s1370_s11 = sphi %s1404_s11, %s2306_s11   ;;  %s1366_s10 = sphi %s1402_s10, %s2305_s10   ;;  %s1362_s9 = sphi %s1400_s9, %s2304_s9  }
   0x5   : > { %p1422_p1 = scmp.eq.s32.totalorder %s1087_s13, 0  ;;  %p1089_p2 = scmp.ge.s32.totalorder %s1374_s12, 1 }
   0x6   : > { %p94_p3 = scmp.lt.s32.totalorder %s1374_s12, 3  ;;  %s1376_s17 = smov [#allocation4]  }
   0x7   : > { %s2241_s14 = scalar_select %p1422_p1, 1, 0 }
   0x8   : > { %p1430_p4 = por %p1422_p1, %p36_p0  ;;  %p1434_p5 = pnand %p1089_p2, %p94_p3 }
   0x9   : > { %s106_s18 = sshll.u32 %s1376_s17, 4  ;;  %s1447_s20 = sadd.s32 1, %s1374_s12   ;;  %s107_s18 = int_to_ptr.vmem [resolvable:$true] %s106_s18 }
   0xa   : > { %s2242_s15 = scalar_select %p1430_p4, 1, 0 }
   0xb   : > { %s2243_s16 = scalar_select %p1434_p5, 1, 0 }
   0xc   : > { %p1213_p6 = pneg %p1434_p5  ;;  %s23_s21 = sadd.s32 1, %s1370_s11 }
   0xd   : > { %s20_s22 = ssub.s32 %s1374_s12, %s1447_s20  ;;  %s1293_s23 = scalar_lea.vmem %s107_s18, 1024 }
   0xe   : > { %p1442_p7 = pnand %p1213_p6, %p1422_p1  ;;  %p1294_p9 = scmp.ne.s32.totalorder %s107_s18, %s1293_s23 }
   0xf   : > { %p1301_p12 = scmp.lt.s32.totalorder %s107_s18, %s107_s18  ;;  %p1302_p13 = scmp.lt.s32.totalorder %s1293_s23, %s1293_s23 }
  0x10   : > { %p1284_p8 = pneg %p1442_p7 }
  0x11   : > { %p1303_p0 = por %p1302_p13, %p1301_p12 }
  0x12   : > { %p1296_p10 = pnand %p1294_p9, %p1284_p8 }
  0x14   : > { %p1297_p11 = pneg %p1296_p10 }
  0x16   : > { %p1304_p2 = pnand %p1303_p0, %p1297_p11 }
  0x18   : > { %1307 = shalt.err (!%p1304_p2)
}
  0x19   : > { %s1377_s24 = smov 64   ;;  %s1378_s25 = smov 4  }
  0x1a   : > { %1216 = dma.hbm_to_vmem [thread:$0]  (!%p1442_p7), %s2224_s1, 1024, %s107_s18, [#allocation5], %s1377_s24, %s1377_s24, %s1378_s25  }
  0x1b   : > { %p21_p3 = scmp.eq.s32.totalorder %s20_s22, 0  ;;  %p30_p6 = scmp.ne.s32.totalorder %s1370_s11, %s1366_s10 }
  0x1c   : > { %p31_p8 = scmp.eq.s32.totalorder %s1374_s12, 0  ;;  %p1222_p9 = scmp.lt.s32.totalorder %s1374_s12, 2 }
  0x1d   : > { %s1464_s28 = scalar_select %p21_p3, %s1370_s11, %s23_s21  }
  0x1e   : > { %p32_p10 = por %p31_p8, %p30_p6  ;;  %s120_s29 = sand.u32 1, %s1370_s11  }
  0x1f   : > { %s1092_s30 = sshll.u32 %s120_s29, 6  ;;  %s1142_s3 = sshll.u32 %s1374_s12, 10 }
  0x20   : > { %s1471_s6 = scalar_lea.hbm %s2223_s0, %s1142_s3  ;;  %s124_s7 = scalar_lea.vmem [#allocation2], %s1092_s30 }
  0x21   : > { %s131_s8 = sshll.u32 %s124_s7, 4  ;;  %p1475_p7 = pnand %p1222_p9, %p32_p10  ;;  %s1473_s8 = int_to_ptr.vmem [resolvable:$true] %s131_s8 }
  0x22   : > { %s1479_s17 = scalar_lea.sflag [#allocation3], %s120_s29  ;;  %s1308_s18 = scalar_lea.hbm %s1471_s6, 1024 }
  0x23   : > { %p1309_p11 = scmp.ne.s32.totalorder %s1471_s6, %s1308_s18  ;;  %p1310_p12 = pneg %p1475_p7 }
  0x24   : > { %s1313_s22 = scalar_lea.hbm %s2223_s0, 2048  ;;  %p1314_p2 = scmp.lt.s32.totalorder %s1471_s6, %s2223_s0 }
  0x25   : > { %p1311_p13 = pnand %p1310_p12, %p1309_p11  ;;  %p1315_p3 = scmp.lt.s32.totalorder %s1313_s22, %s1308_s18 }
  0x27   : > { %p1312_p0 = pneg %p1311_p13  ;;  %p1316_p6 = por %p1315_p3, %p1314_p2 }
  0x29   : > { %p1317_p8 = pnand %p1316_p6, %p1312_p0 }
  0x2b   : > { %1320 = shalt.err (!%p1317_p8)
}
  0x2c   : > { %s1321_s25 = scalar_lea.vmem %s1473_s8, 1024  ;;  %s1379_s26 = smov [#allocation2]  }
  0x2d   : > { %p1322_p9 = scmp.ne.s32.totalorder %s1473_s8, %s1321_s25  ;;  %s1326_s27 = sshll.u32 %s1379_s26, 4  ;;  %s1327_s27 = int_to_ptr.vmem [resolvable:$false] %s1326_s27 }
  0x2e   : > { %s1328_s29 = scalar_lea.vmem %s1327_s27, 2048  ;;  %p1329_p13 = scmp.lt.s32.totalorder %s1473_s8, %s1327_s27 }
  0x2f   : > { %p1324_p10 = pnand %p1322_p9, %p1310_p12  ;;  %p1330_p1 = scmp.lt.s32.totalorder %s1328_s29, %s1321_s25 }
  0x31   : > { %p1325_p11 = pneg %p1324_p10  ;;  %p1331_p4 = por %p1330_p1, %p1329_p13 }
  0x33   : > { %p1332_p5 = pnand %p1331_p4, %p1325_p11 }
  0x35   : > { %1335 = shalt.err (!%p1332_p5)
}
  0x36   : > { %s1380_s30 = smov 128   ;;  %s1381_s3 = smov 8  }
  0x37   : > { %1220 = dma.hbm_to_vmem [thread:$0]  (!%p1475_p7), %s1471_s6, 1024, %s1473_s8, %s1479_s17, %s1380_s30, %s1380_s30, %s1381_s3  }
  0x38   : > { %p2246_p12 = scmp.ne.s32.totalorder %s2243_s16, 0 }
  0x39   : > { %s145_s4 = sand.u32 (!%p2246_p12), 1, %s1366_s10   ;;  %p2247_p1 = scmp.ne.s32.totalorder (!%p2246_p12), %s2242_s15, 0 }
  0x3a   : > { %143 = sbr.rel (%p2246_p12) target bundleno = 1049 (0x419), region = 28  ;;  %s1096_s5 = sshll.u32 (!%p2246_p12), %s145_s4, 6 }
  0x3b   : > { %s146_s7 = scalar_lea.sflag (!%p2246_p12), [#allocation3], %s145_s4  ;;  %s1503_s18 = scalar_lea.vmem (!%p2246_p12), [#allocation2], %s1096_s5 }
  0x3f   : > { %1353 = dma.done.wait (%p2247_p1), %s146_s7, 1024  }
  0x40   : > { %1355 = vsyncadd (%p2247_p1), %s146_s7, 4294966272  ;;  %p2248_p4 = scmp.ne.s32.totalorder %s2241_s14, 0 }
  0x42   : > { %1357 = dma.done.wait (%p2248_p4), [#allocation5], 1024  }
  0x43   : > { %1359 = vsyncadd (%p2248_p4), [#allocation5], 4294966272  ;;  %v1514_v0 = vld [vmem:[%s1503_s18] sm:$0xff]  ;;  %v1517_v1 = vld [vmem:[%s1503_s18 + $0x10] sm:$0xff]  ;;  %v1382_v19 = vmov 0   ;;  %s1098_s14 = sshll.u32 %s1087_s13, 3 }
  0x44   : > { %190 = vmax.xlane.f32.xlu0 %v1514_v0  ;;  %194 = vmax.xlane.f32.xlu1 %v1517_v1  ;;  %v1522_v2 = vld [vmem:[%s1503_s18 + $0x8] sm:$0xff]  ;;  %v1525_v3 = vld [vmem:[%s1503_s18 + $0x18] sm:$0xff]  ;;  %v1528_v4 = vld [vmem:[%s1503_s18 + $0x20] sm:$0xff]  ;;  %p176_p5 = scmp.lt.s32.totalorder %s1098_s14, 15 }
  0x45   : > { %v1531_v5 = vld [vmem:[%s1503_s18 + $0x28] sm:$0xff]  ;;  %v1538_v6 = vld [vmem:[%s1503_s18 + $0x30] sm:$0xff]  ;;  %v1541_v7 = vld [vmem:[%s1503_s18 + $0x38] sm:$0xff] }
  0x46   : > { %s2309_s14 = smov (!%p176_p5, %s1098_s14), 15 }
  0x47   : > { %s1099_s15 = sshll.u32 %s2309_s14, 3 }
  0x48   : > { %192 = vmax.xlane.f32.xlu0 %v1522_v2  ;;  %196 = vmax.xlane.f32.xlu1 %v1525_v3  ;;  %s2176_s8 = scalar_lea.vmem %s2225_s2, %s1099_s15 }
  0x4c   : > { %198 = vmax.xlane.f32.xlu0 %v1528_v4  ;;  %200 = vmax.xlane.f32.xlu1 %v1531_v5 }
  0x50   : > { %202 = vmax.xlane.f32.xlu0 %v1538_v6  ;;  %204 = vmax.xlane.f32.xlu1 %v1541_v7 }
  0xcd   : > { %v1545_v8 = vpop.xlane.xlu0 %190  ;;  %v1547_v9 = vpop.xlane.xlu1 %194 }
  0xce   : > { %vm334_vm0 = vcmp.lt.f32.partialorder %v1514_v0, %v1545_v8  ;;  %vm336_vm1 = vcmp.lt.f32.partialorder %v1517_v1, %v1547_v9  ;;  %vm206_vm4 = vcmp.eq.f32.partialorder %v1514_v0, %v1545_v8  ;;  %vm208_vm7 = vcmp.eq.f32.partialorder %v1517_v1, %v1547_v9 }
  0xcf   : > { %v342_v10 = vsel %vm334_vm0, %v1514_v0, -inf  ;;  %v344_v12 = vsel %vm336_vm1, %v1517_v1, -inf  ;;  %v214_v20 = vsel %vm206_vm4, 1, %v1382_v19  ;;  %v216_v27 = vsel %vm208_vm7, 1, %v1382_v19 }
  0xd0   : > { %350 = vmax.xlane.f32.xlu0 %v342_v10  ;;  %v223_v24 = vshrl.u32 %v214_v20, 16  ;;  %v247_v31 = vshrl.u32 %v216_v27, 16  ;;  %v222_v36 = vand.u32 65535, %v214_v20  ;;  %v246_v40 = vand.u32 65535, %v216_v27 }
  0xd1   : > { %v1554_v11 = vpop.xlane.xlu0 %192  ;;  %v1557_v13 = vpop.xlane.xlu1 %196 }
  0xd2   : > { %vm335_vm2 = vcmp.lt.f32.partialorder %v1522_v2, %v1554_v11  ;;  %vm337_vm3 = vcmp.lt.f32.partialorder %v1525_v3, %v1557_v13  ;;  %vm207_vm8 = vcmp.eq.f32.partialorder %v1522_v2, %v1554_v11  ;;  %vm209_vm11 = vcmp.eq.f32.partialorder %v1525_v3, %v1557_v13 }
  0xd3   : > { %v343_v14 = vsel %vm335_vm2, %v1522_v2, -inf  ;;  %v345_v16 = vsel %vm337_vm3, %v1525_v3, -inf  ;;  %v215_v26 = vsel %vm207_vm8, 1, %v1382_v19  ;;  %v225_v29 = vcvt.s32.f32 %v223_v24 }
  0xd4   : > { %354 = vmax.xlane.f32.xlu0 %v344_v12  ;;  %352 = vmax.xlane.f32.xlu1 %v343_v14  ;;  %v235_v30 = vshrl.u32 %v215_v26, 16  ;;  %v217_v32 = vsel %vm209_vm11, 1, %v1382_v19  ;;  %v249_v34 = vcvt.s32.f32 %v247_v31  ;;  %v224_v38 = vcvt.s32.f32 %v222_v36 }
  0xd5   : > { %v1566_v15 = vpop.xlane.xlu0 %198  ;;  %v1569_v17 = vpop.xlane.xlu1 %200  ;;  %v259_v35 = vshrl.u32 %v217_v32, 16  ;;  %v234_v39 = vand.u32 65535, %v215_v26  ;;  %v248_v43 = vcvt.s32.f32 %v246_v40  ;;  %v258_v44 = vand.u32 65535, %v217_v32 }
  0xd6   : > { %vm338_vm5 = vcmp.lt.f32.partialorder %v1528_v4, %v1566_v15  ;;  %vm339_vm6 = vcmp.lt.f32.partialorder %v1531_v5, %v1569_v17  ;;  %v237_v33 = vcvt.s32.f32 %v235_v30  ;;  %vm210_vm12 = vcmp.eq.f32.partialorder %v1528_v4, %v1566_v15 }
  0xd7   : > { %v346_v18 = vsel %vm338_vm5, %v1528_v4, -inf  ;;  %v347_v22 = vsel %vm339_vm6, %v1531_v5, -inf  ;;  %v261_v37 = vcvt.s32.f32 %v259_v35  ;;  %v218_v41 = vsel %vm210_vm12, 1, %v1382_v19 }
  0xd8   : > { %356 = vmax.xlane.f32.xlu1 %v345_v16  ;;  %358 = vmax.xlane.f32.xlu0 %v346_v18  ;;  %vm211_vm13 = vcmp.eq.f32.partialorder %v1531_v5, %v1569_v17  ;;  %v236_v42 = vcvt.s32.f32 %v234_v39  ;;  %v271_v45 = vshrl.u32 %v218_v41, 16  ;;  %v260_v48 = vcvt.s32.f32 %v258_v44 }
  0xd9   : > { %v1581_v21 = vpop.xlane.xlu0 %202  ;;  %v1584_v23 = vpop.xlane.xlu1 %204  ;;  %v219_v46 = vsel %vm211_vm13, 1, %v1382_v19  ;;  %v270_v56 = vand.u32 65535, %v218_v41 }
  0xda   : > { %vm340_vm9 = vcmp.lt.f32.partialorder %v1538_v6, %v1581_v21  ;;  %vm341_vm10 = vcmp.lt.f32.partialorder %v1541_v7, %v1584_v23  ;;  %vm212_vm14 = vcmp.eq.f32.partialorder %v1538_v6, %v1581_v21  ;;  %vm213_vm15 = vcmp.eq.f32.partialorder %v1541_v7, %v1584_v23 }
  0xdb   : > { %v348_v25 = vsel %vm340_vm9, %v1538_v6, -inf  ;;  %v349_v28 = vsel %vm341_vm10, %v1541_v7, -inf  ;;  %v220_v47 = vsel %vm212_vm14, 1, %v1382_v19  ;;  %v273_v49 = vcvt.s32.f32 %v271_v45 }
  0xdc   : > { %360 = vmax.xlane.f32.xlu1 %v347_v22  ;;  %362 = vmax.xlane.f32.xlu0 %v348_v25  ;;  %v283_v50 = vshrl.u32 %v219_v46, 16  ;;  %v295_v51 = vshrl.u32 %v220_v47, 16  ;;  %v221_v52 = vsel %vm213_vm15, 1, %v1382_v19  ;;  %v272_v58 = vcvt.s32.f32 %v270_v56 }
  0xdd   : > { %v307_v55 = vshrl.u32 %v221_v52, 16  ;;  %v282_v59 = vand.u32 65535, %v219_v46  ;;  %v294_v60 = vand.u32 65535, %v220_v47  ;;  %v306_v63 = vand.u32 65535, %v221_v52 }
  0xde   : > { %v285_v53 = vcvt.s32.f32 %v283_v50  ;;  %v297_v54 = vcvt.s32.f32 %v295_v51 }
  0xdf   : > { %v309_v57 = vcvt.s32.f32 %v307_v55  ;;  %v284_v61 = vcvt.s32.f32 %v282_v59  ;;  %v296_v62 = vcvt.s32.f32 %v294_v60  ;;  %v308_v10 = vcvt.s32.f32 %v306_v63 }
  0xe0   : > { %364 = vmax.xlane.f32.xlu1 %v349_v28  ;;  %228 = vadd.xlane.f32.xlu0 %v225_v29 }
  0xe4   : > { %240 = vadd.xlane.f32.xlu1 %v237_v33  ;;  %252 = vadd.xlane.f32.xlu0 %v249_v34 }
  0xe8   : > { %264 = vadd.xlane.f32.xlu1 %v261_v37  ;;  %226 = vadd.xlane.f32.xlu0 %v224_v38 }
  0xec   : > { %238 = vadd.xlane.f32.xlu1 %v236_v42  ;;  %250 = vadd.xlane.f32.xlu0 %v248_v43 }
  0xf0   : > { %262 = vadd.xlane.f32.xlu1 %v260_v48  ;;  %276 = vadd.xlane.f32.xlu0 %v273_v49 }
  0xf4   : > { %288 = vadd.xlane.f32.xlu1 %v285_v53  ;;  %300 = vadd.xlane.f32.xlu0 %v297_v54 }
  0xf8   : > { %312 = vadd.xlane.f32.xlu1 %v309_v57  ;;  %274 = vadd.xlane.f32.xlu0 %v272_v58 }
  0xfc   : > { %286 = vadd.xlane.f32.xlu1 %v284_v61  ;;  %298 = vadd.xlane.f32.xlu0 %v296_v62 }
 0x100   : > { %310 = vadd.xlane.f32.xlu1 %v308_v10 }
 0x159   : > { %v1609_v12 = vpop.xlane.xlu0 %350 }
 0x15a   : > { %vm366_vm0 = vcmp.eq.f32.partialorder %v1514_v0, %v1609_v12 }
 0x15b   : > { %v374_v14 = vsel %vm366_vm0, 1, %v1382_v19 }
 0x15c   : > { %v383_v16 = vshrl.u32 %v374_v14, 16  ;;  %v382_v30 = vand.u32 65535, %v374_v14 }
 0x15d   : > { %v1614_v18 = vpop.xlane.xlu1 %352  ;;  %v1616_v20 = vpop.xlane.xlu0 %354 }
 0x15e   : > { %vm367_vm1 = vcmp.eq.f32.partialorder %v1522_v2, %v1614_v18  ;;  %vm368_vm2 = vcmp.eq.f32.partialorder %v1517_v1, %v1616_v20  ;;  %v385_v22 = vcvt.s32.f32 %v383_v16  ;;  %v384_v38 = vcvt.s32.f32 %v382_v30 }
 0x15f   : > { %v375_v24 = vsel %vm367_vm1, 1, %v1382_v19  ;;  %v376_v25 = vsel %vm368_vm2, 1, %v1382_v19 }
 0x160   : > { %388 = vadd.xlane.f32.xlu0 %v385_v22  ;;  %v395_v26 = vshrl.u32 %v375_v24, 16  ;;  %v407_v27 = vshrl.u32 %v376_v25, 16  ;;  %v394_v40 = vand.u32 65535, %v375_v24  ;;  %v406_v41 = vand.u32 65535, %v376_v25 }
 0x161   : > { %v1624_v28 = vpop.xlane.xlu1 %356  ;;  %v1626_v29 = vpop.xlane.xlu0 %358 }
 0x162   : > { %vm369_vm3 = vcmp.eq.f32.partialorder %v1525_v3, %v1624_v28  ;;  %vm370_vm4 = vcmp.eq.f32.partialorder %v1528_v4, %v1626_v29  ;;  %v397_v31 = vcvt.s32.f32 %v395_v26  ;;  %v409_v32 = vcvt.s32.f32 %v407_v27 }
 0x163   : > { %v377_v33 = vsel %vm369_vm3, 1, %v1382_v19  ;;  %v378_v35 = vsel %vm370_vm4, 1, %v1382_v19  ;;  %v396_v46 = vcvt.s32.f32 %v394_v40  ;;  %v408_v47 = vcvt.s32.f32 %v406_v41 }
 0x164   : > { %400 = vadd.xlane.f32.xlu1 %v397_v31  ;;  %412 = vadd.xlane.f32.xlu0 %v409_v32  ;;  %v419_v34 = vshrl.u32 %v377_v33, 16  ;;  %v431_v42 = vshrl.u32 %v378_v35, 16  ;;  %v418_v48 = vand.u32 65535, %v377_v33  ;;  %v430_v59 = vand.u32 65535, %v378_v35  ;;  %v1266_v33 = vld [vmem:[#allocation4 + $0x38] sm:$0xff]  }
 0x165   : > { %v1634_v36 = vpop.xlane.xlu1 %360  ;;  %v1636_v37 = vpop.xlane.xlu0 %362  ;;  %1191 = vmatprep.subr.bf16.mxu1 %v1266_v33  ;;  %1159 = vmatprep.subr.bf16.mxu0 %v1266_v33 }
 0x166   : > { %vm372_vm5 = vcmp.eq.f32.partialorder %v1538_v6, %v1636_v37  ;;  %v421_v39 = vcvt.s32.f32 %v419_v34  ;;  %vm371_vm6 = vcmp.eq.f32.partialorder %v1531_v5, %v1634_v36  ;;  %v433_v50 = vcvt.s32.f32 %v431_v42  ;;  %1199 = vmatpush3.bf16.msra.mxu1 %v1266_v33  ;;  %1160 = vmatpush3.bf16.msra.mxu0 %v1266_v33 }
 0x167   : > { %v380_v43 = vsel %vm372_vm5, 1, %v1382_v19  ;;  %v379_v49 = vsel %vm371_vm6, 1, %v1382_v19  ;;  %v420_v56 = vcvt.s32.f32 %v418_v48 }
 0x168   : > { %424 = vadd.xlane.f32.xlu1 %v421_v39  ;;  %386 = vadd.xlane.f32.xlu0 %v384_v38  ;;  %v455_v51 = vshrl.u32 %v380_v43, 16  ;;  %v443_v57 = vshrl.u32 %v379_v49, 16  ;;  %v442_v31 = vand.u32 65535, %v379_v49  ;;  %v454_v32 = vand.u32 65535, %v380_v43 }
 0x169   : > { %v1643_v44 = vpop.xlane.xlu1 %364  ;;  %v229_v45 = vpop.xlane.xlu0 %228 }
 0x16a   : > { %vm373_vm7 = vcmp.eq.f32.partialorder %v1541_v7, %v1643_v44  ;;  %v231_v55 = vcvt.f32.s32 %v229_v45  ;;  %v457_v58 = vcvt.s32.f32 %v455_v51  ;;  %v445_v22 = vcvt.s32.f32 %v443_v57 }
 0x16b   : > { %v1649_v54 = vsel %vm373_vm7, 1, %v1382_v19  ;;  %v432_v19 = vcvt.s32.f32 %v430_v59  ;;  %v456_v48 = vcvt.s32.f32 %v454_v32 }
 0x16c   : > { %398 = vadd.xlane.f32.xlu1 %v396_v46  ;;  %410 = vadd.xlane.f32.xlu0 %v408_v47  ;;  %v467_v63 = vshrl.u32 %v1649_v54, 16  ;;  %v232_v10 = vshll.u32 %v231_v55, 16  ;;  %v444_v46 = vcvt.s32.f32 %v442_v31  ;;  %v1267_v47 = vld [vmem:[#allocation4 + $0x30] sm:$0xff]   ;;  %v466_v49 = vand.u32 65535, %v1649_v54  ;;  %v1268_v55 = vld [vmem:[#allocation4 + $0x28] sm:$0xff]  }
 0x16d   : > { %v241_v52 = vpop.xlane.xlu1 %240  ;;  %v253_v53 = vpop.xlane.xlu0 %252  ;;  %1192 = vmatprep.subr.bf16.mxu1 %v1267_v47  ;;  %1161 = vmatprep.subr.bf16.mxu0 %v1267_v47 }
 0x16e   : > { %v243_v60 = vcvt.f32.s32 %v241_v52  ;;  %v255_v14 = vcvt.f32.s32 %v253_v53  ;;  %v469_v30 = vcvt.s32.f32 %v467_v63  ;;  %1200 = vmatpush3.bf16.msra.mxu1 %v1267_v47  ;;  %1162 = vmatpush3.bf16.msra.mxu0 %v1267_v47  ;;  %v468_v57 = vcvt.s32.f32 %v466_v49 }
 0x16f   : > { %1193 = vmatprep.subr.bf16.mxu1 %v1268_v55  ;;  %1163 = vmatprep.subr.bf16.mxu0 %v1268_v55 }
 0x170   : > { %422 = vadd.xlane.f32.xlu1 %v420_v56  ;;  %436 = vadd.xlane.f32.xlu0 %v433_v50  ;;  %v244_v25 = vshll.u32 %v243_v60, 16  ;;  %v256_v34 = vshll.u32 %v255_v14, 16 }
 0x171   : > { %v265_v61 = vpop.xlane.xlu1 %264  ;;  %v227_v62 = vpop.xlane.xlu0 %226 }
 0x172   : > { %v230_v16 = vcvt.f32.s32 %v227_v62  ;;  %v267_v39 = vcvt.f32.s32 %v265_v61  ;;  %1201 = vmatpush3.bf16.msra.mxu1 %v1268_v55  ;;  %1164 = vmatpush3.bf16.msra.mxu0 %v1268_v55 }
 0x174   : > { %v1652_v24 = vadd.s32 %v232_v10, %v230_v16  ;;  %448 = vadd.xlane.f32.xlu1 %v445_v22  ;;  %460 = vadd.xlane.f32.xlu0 %v457_v58  ;;  %v268_v50 = vshll.u32 %v267_v39, 16  ;;  %v1270_v22 = vld [vmem:[#allocation4 + $0x18] sm:$0xff]  }
 0x175   : > { %v239_v26 = vpop.xlane.xlu1 %238  ;;  %v251_v27 = vpop.xlane.xlu0 %250 }
 0x176   : > { %vm318_vm8 = vcmp.ge.s32.totalorder %v1652_v24, 3  ;;  %v242_v35 = vcvt.f32.s32 %v239_v26  ;;  %v254_v38 = vcvt.f32.s32 %v251_v27 }
 0x177   : > { %v1663_v43 = vsel %vm318_vm8, %v1545_v8, %v1609_v12 }
 0x178   : > { %v1655_v40 = vadd.s32 %v244_v25, %v242_v35  ;;  %v1657_v41 = vadd.s32 %v256_v34, %v254_v38  ;;  %472 = vadd.xlane.f32.xlu1 %v469_v30  ;;  %434 = vadd.xlane.f32.xlu0 %v432_v19  ;;  %vm502_vm11 = vcmp.lt.f32.partialorder %v1514_v0, %v1663_v43  ;;  %v1271_v38 = vld [vmem:[#allocation4 + $0x10] sm:$0xff]  }
 0x179   : > { %v263_v42 = vpop.xlane.xlu1 %262  ;;  %v277_v45 = vpop.xlane.xlu0 %276  ;;  %v510_v58 = vsel %vm502_vm11, %v1514_v0, -inf }
 0x17a   : > { %vm319_vm9 = vcmp.ge.s32.totalorder %v1655_v40, 3  ;;  %vm320_vm10 = vcmp.ge.s32.totalorder %v1657_v41, 3  ;;  %v266_v51 = vcvt.f32.s32 %v263_v42  ;;  %v279_v56 = vcvt.f32.s32 %v277_v45 }
 0x17b   : > { %v1676_v53 = vsel %vm319_vm9, %v1554_v11, %v1614_v18  ;;  %v1682_v54 = vsel %vm320_vm10, %v1547_v9, %v1616_v20  ;;  %v1269_v9 = vld [vmem:[#allocation4 + $0x20] sm:$0xff]  }
 0x17c   : > { %446 = vadd.xlane.f32.xlu1 %v444_v46  ;;  %458 = vadd.xlane.f32.xlu0 %v456_v48  ;;  %v1670_v8 = vadd.s32 %v268_v50, %v266_v51  ;;  %vm503_vm13 = vcmp.lt.f32.partialorder %v1522_v2, %v1676_v53  ;;  %vm504_vm14 = vcmp.lt.f32.partialorder %v1517_v1, %v1682_v54  ;;  %v280_v60 = vshll.u32 %v279_v56, 16 }
 0x17d   : > { %v289_v12 = vpop.xlane.xlu1 %288  ;;  %v301_v52 = vpop.xlane.xlu0 %300  ;;  %1194 = vmatprep.subr.bf16.mxu1 %v1269_v9  ;;  %1165 = vmatprep.subr.bf16.mxu0 %v1269_v9  ;;  %v511_v63 = vsel %vm503_vm13, %v1522_v2, -inf  ;;  %v512_v10 = vsel %vm504_vm14, %v1517_v1, -inf }
 0x17e   : > { %vm321_vm12 = vcmp.ge.s32.totalorder %v1670_v8, 3  ;;  %v291_v11 = vcvt.f32.s32 %v289_v12  ;;  %v303_v61 = vcvt.f32.s32 %v301_v52  ;;  %1202 = vmatpush3.bf16.msra.mxu1 %v1269_v9  ;;  %1166 = vmatpush3.bf16.msra.mxu0 %v1269_v9 }
 0x17f   : > { %v1694_v59 = vsel %vm321_vm12, %v1557_v13, %v1624_v28  ;;  %1195 = vmatprep.subr.bf16.mxu1 %v1270_v22  ;;  %1167 = vmatprep.subr.bf16.mxu0 %v1270_v22 }
 0x180   : > { %470 = vadd.xlane.f32.xlu1 %v468_v57  ;;  %518 = vmax.xlane.f32.xlu0 %v510_v58  ;;  %vm505_vm15 = vcmp.lt.f32.partialorder %v1525_v3, %v1694_v59  ;;  %v292_v13 = vshll.u32 %v291_v11, 16  ;;  %v304_v19 = vshll.u32 %v303_v61, 16 }
 0x181   : > { %v313_v18 = vpop.xlane.xlu1 %312  ;;  %v275_v20 = vpop.xlane.xlu0 %274  ;;  %v513_v30 = vsel %vm505_vm15, %v1525_v3, -inf }
 0x182   : > { %v278_v62 = vcvt.f32.s32 %v275_v20  ;;  %v315_v27 = vcvt.f32.s32 %v313_v18  ;;  %1203 = vmatpush3.bf16.msra.mxu1 %v1270_v22  ;;  %1168 = vmatpush3.bf16.msra.mxu0 %v1270_v22 }
 0x183   : > { %1196 = vmatprep.subr.bf16.mxu1 %v1271_v38  ;;  %1169 = vmatprep.subr.bf16.mxu0 %v1271_v38 }
 0x184   : > { %v1698_v14 = vadd.s32 %v280_v60, %v278_v62  ;;  %520 = vmax.xlane.f32.xlu1 %v511_v63  ;;  %522 = vmax.xlane.f32.xlu0 %v512_v10 }
 0x185   : > { %v287_v28 = vpop.xlane.xlu1 %286  ;;  %v299_v16 = vpop.xlane.xlu0 %298 }
 0x186   : > { %vm322_vm0 = vcmp.ge.s32.totalorder %v1698_v14, 3  ;;  %v290_v25 = vcvt.f32.s32 %v287_v28  ;;  %v302_v26 = vcvt.f32.s32 %v299_v16  ;;  %1204 = vmatpush3.bf16.msra.mxu1 %v1271_v38  ;;  %1170 = vmatpush3.bf16.msra.mxu0 %v1271_v38  ;;  %v327_v38 = vsub.s32 3, %v1655_v40 }
 0x187   : > { %v1708_v31 = vsel %vm322_vm0, %v1566_v15, %v1626_v29  ;;  %v316_v15 = vshll.u32 %v315_v27, 16 }
 0x188   : > { %v1710_v32 = vadd.s32 %v292_v13, %v290_v25  ;;  %v1712_v33 = vadd.s32 %v304_v19, %v302_v26  ;;  %524 = vmax.xlane.f32.xlu1 %v513_v30  ;;  %vm506_vm1 = vcmp.lt.f32.partialorder %v1528_v4, %v1708_v31  ;;  %v326_v25 = vsub.s32 3, %v1652_v24 }
 0x189   : > { %v311_v34 = vpop.xlane.xlu1 %310  ;;  %v514_v35 = vsel %vm506_vm1, %v1528_v4, -inf }
 0x18a   : > { %vm323_vm2 = vcmp.ge.s32.totalorder %v1710_v32, 3  ;;  %vm2231_vm3 = vcmp.ge.s32.totalorder %v1712_v33, 3  ;;  %526 = vmax.xlane.f32.xlu0 %v514_v35  ;;  %v314_v29 = vcvt.f32.s32 %v311_v34 }
 0x18b   : > { %v1723_v39 = vsel %vm323_vm2, %v1569_v17, %v1634_v36  ;;  %v1729_v42 = vsel %vm2231_vm3, %v1581_v21, %v1636_v37  ;;  %v1272_v36 = vld [vmem:[#allocation4 + $0x8] sm:$0xff]   ;;  %v1273_v37 = vld [vmem:[#allocation4] sm:$0xff]  }
 0x18c   : > { %vm507_vm4 = vcmp.lt.f32.partialorder %v1531_v5, %v1723_v39  ;;  %vm508_vm5 = vcmp.lt.f32.partialorder %v1538_v6, %v1729_v42  ;;  %v1735_v45 = vadd.s32 %v316_v15, %v314_v29  ;;  %1197 = vmatprep.subr.bf16.mxu1 %v1272_v36  ;;  %1171 = vmatprep.subr.bf16.mxu0 %v1272_v36 }
 0x18d   : > { %v515_v46 = vsel %vm507_vm4, %v1531_v5, -inf  ;;  %v516_v17 = vsel %vm508_vm5, %v1538_v6, -inf  ;;  %1205 = vmatpush3.bf16.msra.mxu1 %v1272_v36  ;;  %1172 = vmatpush3.bf16.msra.mxu0 %v1272_v36 }
 0x18e   : > { %528 = vmax.xlane.f32.xlu1 %v515_v46  ;;  %530 = vmax.xlane.f32.xlu0 %v516_v17  ;;  %vm2230_vm6 = vcmp.ge.s32.totalorder %v1735_v45, 3 }
 0x18f   : > { %v1744_v21 = vsel %vm2230_vm6, %v1584_v23, %v1643_v44  ;;  %1198 = vmatprep.subr.bf16.mxu1 %v1273_v37  ;;  %1173 = vmatprep.subr.bf16.mxu0 %v1273_v37 }
 0x190   : > { %vm509_vm7 = vcmp.lt.f32.partialorder %v1541_v7, %v1744_v21 }
 0x191   : > { %v517_v47 = vsel %vm509_vm7, %v1541_v7, -inf  ;;  %1206 = vmatpush3.bf16.msra.mxu1 %v1273_v37  ;;  %1174 = vmatpush3.bf16.msra.mxu0 %v1273_v37 }
 0x192   : > { %532 = vmax.xlane.f32.xlu1 %v517_v47 }
 0x1e9   : > { %v389_v48 = vpop.xlane.xlu0 %388 }
 0x1ea   : > { %v391_v56 = vcvt.f32.s32 %v389_v48 }
 0x1ec   : > { %v392_v18 = vshll.u32 %v391_v56, 16 }
 0x1ed   : > { %v401_v49 = vpop.xlane.xlu1 %400  ;;  %v413_v50 = vpop.xlane.xlu0 %412 }
 0x1ee   : > { %v403_v11 = vcvt.f32.s32 %v401_v49  ;;  %v415_v20 = vcvt.f32.s32 %v413_v50  ;;  %v328_v50 = vsub.s32 3, %v1657_v41 }
 0x1f0   : > { %v404_v16 = vshll.u32 %v403_v11, 16  ;;  %v416_v26 = vshll.u32 %v415_v20, 16  ;;  %v332_v11 = vsub.s32 3, %v1712_v33 }
 0x1f1   : > { %v425_v51 = vpop.xlane.xlu1 %424  ;;  %v387_v12 = vpop.xlane.xlu0 %386 }
 0x1f2   : > { %v390_v57 = vcvt.f32.s32 %v387_v12  ;;  %v427_v60 = vcvt.f32.s32 %v425_v51 }
 0x1f4   : > { %v393_v62 = vadd.s32 %v392_v18, %v390_v57  ;;  %v428_v34 = vshll.u32 %v427_v60, 16 }
 0x1f5   : > { %v399_v23 = vpop.xlane.xlu1 %398  ;;  %v411_v44 = vpop.xlane.xlu0 %410 }
 0x1f6   : > { %v402_v61 = vcvt.f32.s32 %v399_v23  ;;  %v414_v63 = vcvt.f32.s32 %v411_v44  ;;  %vm1751_vm11 = vcmp.ge.s32.totalorder %v393_v62, %v326_v25  ;;  %v329_v23 = vsub.s32 3, %v1670_v8 }
 0x1f7   : > { %vm494_vm15 = vmor %vm318_vm8, %vm1751_vm11 }
 0x1f8   : > { %v405_v35 = vadd.s32 %v404_v16, %v402_v61  ;;  %v417_v29 = vadd.s32 %v416_v26, %v414_v63 }
 0x1f9   : > { %v423_v52 = vpop.xlane.xlu1 %422  ;;  %v437_v55 = vpop.xlane.xlu0 %436 }
 0x1fa   : > { %v439_v10 = vcvt.f32.s32 %v437_v55  ;;  %v426_v22 = vcvt.f32.s32 %v423_v52  ;;  %vm487_vm13 = vcmp.ge.s32.totalorder %v405_v35, %v327_v38  ;;  %v330_v52 = vsub.s32 3, %v1698_v14 }
 0x1fb   : > { %vm488_vm14 = vcmp.ge.s32.totalorder %v417_v29, %v328_v50  ;;  %vm495_vm5 = vmor %vm319_vm9, %vm487_vm13 }
 0x1fc   : > { %v440_v46 = vshll.u32 %v439_v10, 16  ;;  %v429_v37 = vadd.s32 %v428_v34, %v426_v22  ;;  %vm496_vm6 = vmor %vm320_vm10, %vm488_vm14  ;;  %vm2257_vm14 = vcmp.ge.s32.totalorder %v1712_v33, 3  ;;  %v333_v33 = vsub.s32 3, %v1735_v45 }
 0x1fd   : > { %v449_v58 = vpop.xlane.xlu1 %448  ;;  %v461_v9 = vpop.xlane.xlu0 %460 }
 0x1fe   : > { %v451_v19 = vcvt.f32.s32 %v449_v58  ;;  %v463_v27 = vcvt.f32.s32 %v461_v9  ;;  %v331_v58 = vsub.s32 3, %v1710_v32  ;;  %vm489_vm1 = vcmp.ge.s32.totalorder %v429_v37, %v329_v23 }
 0x200   : > { %v452_v47 = vshll.u32 %v451_v19, 16  ;;  %v464_v51 = vshll.u32 %v463_v27, 16 }
 0x201   : > { %v473_v13 = vpop.xlane.xlu1 %472  ;;  %v435_v28 = vpop.xlane.xlu0 %434 }
 0x202   : > { %v438_v30 = vcvt.f32.s32 %v435_v28  ;;  %v475_v18 = vcvt.f32.s32 %v473_v13 }
 0x204   : > { %v441_v12 = vadd.s32 %v440_v46, %v438_v30  ;;  %v476_v14 = vshll.u32 %v475_v18, 16 }
 0x205   : > { %v447_v17 = vpop.xlane.xlu1 %446  ;;  %v459_v36 = vpop.xlane.xlu0 %458 }
 0x206   : > { %v450_v48 = vcvt.f32.s32 %v447_v17  ;;  %v462_v49 = vcvt.f32.s32 %v459_v36  ;;  %vm490_vm4 = vcmp.ge.s32.totalorder %v441_v12, %v330_v52 }
 0x207   : > { %vm1782_vm9 = vmor %vm322_vm0, %vm490_vm4 }
 0x208   : > { %v453_v44 = vadd.s32 %v452_v47, %v450_v48  ;;  %v465_v55 = vadd.s32 %v464_v51, %v462_v49 }
 0x209   : > { %v471_v56 = vpop.xlane.xlu1 %470  ;;  %v519_v57 = vpop.xlane.xlu0 %518 }
 0x20a   : > { %v1764_v9 = vsel %vm494_vm15, %v1663_v43, %v519_v57  ;;  %vm491_vm7 = vcmp.ge.s32.totalorder %v453_v44, %v331_v58  ;;  %vm492_vm3 = vcmp.ge.s32.totalorder %v465_v55, %v332_v11  ;;  %vm497_vm15 = vmor %vm321_vm12, %vm489_vm1  ;;  %v474_v20 = vcvt.f32.s32 %v471_v56 }
 0x20b   : > { %vm550_vm8 = vcmp.eq.f32.partialorder %v1514_v0, %v1764_v9  ;;  %vm542_vm11 = vcmp.gt.f32.partialorder %v1514_v0, %v1764_v9  ;;  %vm1802_vm0 = vmor %vm323_vm2, %vm491_vm7  ;;  %v1275_v9 = vld [vmem:[%s1503_s18] sm:$0xff] }
 0x20c   : > { %vm1796_vm12 = vmor %vm542_vm11, %vm550_vm8  ;;  %v477_v32 = vadd.s32 %v476_v14, %v474_v20 }
 0x20d   : > { %v521_v24 = vpop.xlane.xlu1 %520  ;;  %v523_v43 = vpop.xlane.xlu0 %522  ;;  %vm1811_vm1 = vmor %vm2257_vm14, %vm492_vm3 }
 0x20e   : > { %v1778_v40 = vsel %vm495_vm5, %v1676_v53, %v521_v24  ;;  %v1807_v60 = vsel %vm496_vm6, %v1682_v54, %v523_v43  ;;  %v1383_v54 = vmov 1.0|1.0  }
 0x20f   : > { %vm2233_vm10 = vcmp.eq.f32.partialorder %v1522_v2, %v1778_v40  ;;  %vm2232_vm13 = vcmp.gt.f32.partialorder %v1522_v2, %v1778_v40  ;;  %vm544_vm6 = vcmp.gt.f32.partialorder %v1517_v1, %v1807_v60  ;;  %vm552_vm4 = vcmp.eq.f32.partialorder %v1517_v1, %v1807_v60 }
 0x210   : > { %vm1132_vm2 = vmpackc.low %vm2233_vm10, %vm550_vm8 }
 0x211   : > { %v525_v62 = vpop.xlane.xlu1 %524  ;;  %1183 = vmatprep.mubr.msk.bf16.mxu1 %vm1132_vm2, %v1383_v54  ;;  %vm559_vm3 = vmor %vm2232_vm13, %vm2233_vm10  ;;  %vm493_vm2 = vcmp.ge.s32.totalorder %v477_v32, %v333_v33 }
 0x212   : > { %v1822_v63 = vsel %vm497_vm15, %v1694_v59, %v525_v62  ;;  %vm1124_vm15 = vmpackc.low %vm559_vm3, %vm1796_vm12 }
 0x213   : > { %vm2236_vm5 = vcmp.gt.f32.partialorder %v1525_v3, %v1822_v63  ;;  %vm2237_vm7 = vcmp.eq.f32.partialorder %v1525_v3, %v1822_v63  ;;  %v527_v59 = vpop.xlane.xlu0 %526  ;;  %1175 = vmatprep.mubr.msk.bf16.mxu0 %vm1124_vm15, %v1383_v54  ;;  %vm560_vm3 = vmor %vm544_vm6, %vm552_vm4 }
 0x214   : > { %vm561_vm14 = vmor %vm2236_vm5, %vm2237_vm7  ;;  %v1850_v10 = vsel %vm1782_vm9, %v1708_v31, %v527_v59  ;;  %v1274_v59 = vld [vmem:[%s1503_s18 + $0x10] sm:$0xff] }
 0x215   : > { %vm1134_vm12 = vmpackc.low %vm2237_vm7, %vm552_vm4  ;;  %vm2235_vm9 = vcmp.gt.f32.partialorder %v1528_v4, %v1850_v10  ;;  %vm2239_vm13 = vcmp.eq.f32.partialorder %v1528_v4, %v1850_v10 }
 0x216   : > { %1184 = vmatmul.mubr.msk.bf16.vlgmr.msra.gmra.mxu1 %vm1134_vm12, %v1383_v54  ;;  %vm1126_vm15 = vmpackc.low %vm561_vm14, %vm560_vm3  ;;  %vm2260_vm3 = vcmp.ge.s32.totalorder %v1735_v45, 3  ;;  %v1384_v45 = vmov 127  }
 0x217   : > { %v529_v13 = vpop.xlane.xlu1 %528  ;;  %v531_v31 = vpop.xlane.xlu0 %530  ;;  %1176 = vmatmul.mubr.msk.bf16.vlgmr.msra.gmra.mxu0 %vm1126_vm15, %v1383_v54  ;;  %vm501_vm10 = vmor %vm2260_vm3, %vm493_vm2  ;;  %1264 = vset.pattern.permute.xlu1 %v1384_v45 }
 0x218   : > { %v1871_v28 = vsel %vm1802_vm0, %v1723_v39, %v529_v13  ;;  %v1876_v16 = vsel %vm1811_vm1, %v1729_v42, %v531_v31  ;;  %vm562_vm1 = vmor %vm2235_vm9, %vm2239_vm13  ;;  %1265 = vset.pattern.permute.xlu0 %v1384_v45 }
 0x219   : > { %vm2234_vm14 = vcmp.gt.f32.partialorder %v1531_v5, %v1871_v28  ;;  %vm2238_vm12 = vcmp.eq.f32.partialorder %v1531_v5, %v1871_v28  ;;  %vm548_vm15 = vcmp.gt.f32.partialorder %v1538_v6, %v1876_v16  ;;  %vm556_vm2 = vcmp.eq.f32.partialorder %v1538_v6, %v1876_v16 }
 0x21a   : > { %vm563_vm0 = vmor %vm2234_vm14, %vm2238_vm12 }
 0x21b   : > { %v533_v39 = vpop.xlane.xlu1 %532  ;;  %vm1136_vm3 = vmpackc.low %vm2238_vm12, %vm2239_vm13 }
 0x21c   : > { %v1907_v42 = vsel %vm501_vm10, %v1744_v21, %v533_v39  ;;  %1187 = vmatprep.mubr.msk.bf16.mxu1 %vm1136_vm3, %v1383_v54  ;;  %vm1128_vm14 = vmpackc.low %vm563_vm0, %vm562_vm1 }
 0x21d   : > { %vm564_vm9 = vmor %vm548_vm15, %vm556_vm2  ;;  %vm2240_vm5 = vcmp.gt.f32.partialorder %v1541_v7, %v1907_v42  ;;  %vm557_vm7 = vcmp.eq.f32.partialorder %v1541_v7, %v1907_v42  ;;  %1179 = vmatprep.mubr.msk.bf16.mxu0 %vm1128_vm14, %v1383_v54 }
 0x21e   : > { %vm565_vm10 = vmor %vm2240_vm5, %vm557_vm7 }
 0x21f   : > { %vm1138_vm0 = vmpackc.low %vm557_vm7, %vm556_vm2 }
 0x220   : > { %1188 = vmatmul.mubr.msk.bf16.gmra.mxu1 %vm1138_vm0, %v1383_v54  ;;  %vm1130_vm1 = vmpackc.low %vm565_vm10, %vm564_vm9 }
 0x221   : > { %1180 = vmatmul.mubr.msk.bf16.gmra.mxu0 %vm1130_vm1, %v1383_v54 }
 0x2d6   : > { %v1185_v21 = vpop.f32.mrf.mxu1 }
 0x2d7   : > { %v1177_v22 = vpop.f32.mrf.mxu0 }
 0x2d8   : > { %v736_v19 = vpop.f32.mrf.mxu1  ;;  %v769_v25 = vsub.f32 %v1177_v22, %v1185_v21  ;;  %v1276_v22 = vld [vmem:[%s1503_s18 + $0x18] sm:$0xff] }
 0x2d9   : > { %v704_v26 = vpop.f32.mrf.mxu0 }
 0x2da   : > { %v1186_v27 = vpop.f32.mrf.mxu1  ;;  %v777_v30 = vsub.f32 3.0, %v769_v25  ;;  %v767_v34 = vsub.f32 %v704_v26, %v736_v19 }
 0x2db   : > { %v1178_v35 = vpop.f32.mrf.mxu0 }
 0x2dc   : > { %v1931_v38 = vpop.f32.mrf.mxu1  ;;  %v775_v15 = vsub.f32 3.0, %v767_v34  ;;  %v770_v29 = vsub.f32 %v1178_v35, %v1186_v27  ;;  %795 = vperm.xlu1 %1264, %v777_v30  }
 0x2dd   : > { %v707_v46 = vpop.f32.mrf.mxu0 }
 0x2de   : > { %v778_v17 = vsub.f32 3.0, %v770_v29  ;;  %v1934_v36 = vsub.f32 %v707_v46, %v1931_v38  ;;  %785 = vperm.xlu0 %1265, %v775_v15  }
 0x2e0   : > { %800 = vperm.xlu1 %1264, %v778_v17   ;;  %v1936_v37 = vpop.f32.mrf.mxu1  ;;  %v776_v48 = vsub.f32 3.0, %v1934_v36 }
 0x2e1   : > { %v1181_v47 = vpop.f32.mrf.mxu0 }
 0x2e2   : > { %v1940_v49 = vsub.f32 %v1181_v47, %v1936_v37  ;;  %v1942_v50 = vpop.f32.mrf.mxu1 }
 0x2e3   : > { %v720_v51 = vpop.f32.mrf.mxu0 }
 0x2e4   : > { %790 = vperm.xlu1 %1264, %v776_v48   ;;  %v1944_v12 = vpop.f32.mrf.mxu1  ;;  %v781_v44 = vsub.f32 3.0, %v1940_v49  ;;  %v1948_v52 = vsub.f32 %v720_v51, %v1942_v50 }
 0x2e5   : > { %v1182_v23 = vpop.f32.mrf.mxu0 }
 0x2e6   : > { %v1950_v55 = vpop.f32.mrf.mxu1  ;;  %v779_v57 = vsub.f32 3.0, %v1948_v52  ;;  %v1957_v11 = vsub.f32 %v1182_v23, %v1944_v12 }
 0x2e7   : > { %v723_v56 = vpop.f32.mrf.mxu0 }
 0x2e8   : > { %815 = vperm.xlu1 %1264, %v781_v44   ;;  %v1954_v58 = vsub.f32 %v723_v56, %v1950_v55  ;;  %v782_v24 = vsub.f32 3.0, %v1957_v11 }
 0x2ea   : > { %v780_v18 = vsub.f32 3.0, %v1954_v58 }
 0x2ec   : > { %805 = vperm.xlu1 %1264, %v779_v57  }
 0x2f0   : > { %810 = vperm.xlu1 %1264, %v780_v18  }
 0x2f4   : > { %820 = vperm.xlu1 %1264, %v782_v24  }
 0x357   : > { %v796_v43 = vpop.permute.xlu1 %795 }
 0x358   : > { %vm825_vm9 = vcmp.le.f32.partialorder %v1185_v21, %v796_v43  ;;  %v849_v20 = vmin.f32 %v1185_v21, %v796_v43 }
 0x359   : > { %vm833_vm14 = vmand %vm552_vm4, %vm825_vm9  ;;  %v786_v41 = vpop.permute.xlu0 %785 }
 0x35a   : > { %v857_v8 = vadd.f32 %v849_v20, %v769_v25  ;;  %vm823_vm3 = vcmp.le.f32.partialorder %v736_v19, %v786_v41  ;;  %v847_v53 = vmin.f32 %v736_v19, %v786_v41  ;;  %vm1967_vm10 = vmor %vm544_vm6, %vm833_vm14  ;;  %vm2265_vm6 = vcmp.eq.f32.partialorder %v1525_v3, %v1822_v63 }
 0x35b   : > { %vm831_vm0 = vmand %vm550_vm8, %vm823_vm3  ;;  %v801_v61 = vpop.permute.xlu1 %800 }
 0x35c   : > { %v855_v62 = vadd.f32 %v847_v53, %v767_v34  ;;  %vm826_vm4 = vcmp.le.f32.partialorder %v1186_v27, %v801_v61  ;;  %v850_v32 = vmin.f32 %v1186_v27, %v801_v61  ;;  %vm865_vm1 = vcmp.eq.f32.partialorder %v857_v8, 1.0  ;;  %vm1977_vm9 = vmor %vm542_vm11, %vm831_vm0 }
 0x35d   : > { %vm1984_vm14 = vmand %vm2265_vm6, %vm826_vm4  ;;  %vm905_vm8 = vcmp.eq.f32.partialorder %v857_v8, 2.0  ;;  %vm945_vm6 = vcmp.eq.f32.partialorder %v857_v8, 3.0  ;;  %v1281_v8 = vld [vmem:[%s1503_s18 + $0x28] sm:$0xff] }
 0x35e   : > { %v858_v60 = vadd.f32 %v850_v32, %v770_v29  ;;  %vm873_vm3 = vmand %vm1967_vm10, %vm865_vm1  ;;  %vm863_vm12 = vcmp.eq.f32.partialorder %v855_v62, 1.0  ;;  %vm2268_vm1 = vcmp.gt.f32.partialorder %v1525_v3, %v1822_v63  ;;  %vm903_vm5 = vcmp.eq.f32.partialorder %v855_v62, 2.0 }
 0x35f   : > { %v881_v33 = vsel %vm873_vm3, %v1274_v59, 0.0  ;;  %v791_v0 = vpop.permute.xlu1 %790  ;;  %vm871_vm11 = vmand %vm1977_vm9, %vm863_vm12 }
 0x360   : > { %891 = vadd.xlane.f32.xlu0 %v881_v33  ;;  %v879_v13 = vsel %vm871_vm11, %v1275_v9, 0.0  ;;  %vm913_vm0 = vmand %vm1967_vm10, %vm905_vm8  ;;  %vm866_vm4 = vcmp.eq.f32.partialorder %v858_v60, 1.0  ;;  %v848_v31 = vmin.f32 %v1931_v38, %v791_v0  ;;  %vm906_vm8 = vcmp.eq.f32.partialorder %v858_v60, 2.0 }
 0x361   : > { %887 = vadd.xlane.f32.xlu1 %v879_v13  ;;  %vm2002_vm3 = vmor %vm2268_vm1, %vm1984_vm14  ;;  %v921_v45 = vsel %vm913_vm0, %v1274_v59, 0.0  ;;  %vm824_vm11 = vcmp.le.f32.partialorder %v1931_v38, %v791_v0  ;;  %vm946_vm0 = vcmp.eq.f32.partialorder %v858_v60, 3.0 }
 0x362   : > { %vm874_vm12 = vmand %vm2002_vm3, %vm866_vm4  ;;  %v856_v3 = vadd.f32 %v848_v31, %v1934_v36  ;;  %vm2271_vm4 = vcmp.eq.f32.partialorder %v1522_v2, %v1778_v40 }
 0x363   : > { %v816_v21 = vpop.permute.xlu1 %815  ;;  %v882_v19 = vsel %vm874_vm12, %v1276_v22, 0.0  ;;  %vm953_vm13 = vmand %vm1967_vm10, %vm945_vm6  ;;  %vm943_vm6 = vcmp.eq.f32.partialorder %v855_v62, 3.0 }
 0x364   : > { %931 = vadd.xlane.f32.xlu0 %v921_v45  ;;  %vm914_vm14 = vmand %vm2002_vm3, %vm906_vm8  ;;  %v961_v25 = vsel %vm953_vm13, %v1274_v59, 0.0  ;;  %v853_v27 = vmin.f32 %v1936_v37, %v816_v21  ;;  %vm904_vm8 = vcmp.eq.f32.partialorder %v856_v3, 2.0 }
 0x365   : > { %893 = vadd.xlane.f32.xlu1 %v882_v19  ;;  %vm2018_vm1 = vmand %vm2271_vm4, %vm824_vm11  ;;  %v922_v30 = vsel %vm914_vm14, %v1276_v22, 0.0  ;;  %vm829_vm11 = vcmp.le.f32.partialorder %v1936_v37, %v816_v21  ;;  %vm864_vm14 = vcmp.eq.f32.partialorder %v856_v3, 1.0 }
 0x366   : > { %vm911_vm10 = vmand %vm1977_vm9, %vm903_vm5  ;;  %v2035_v15 = vadd.f32 %v853_v27, %v1940_v49  ;;  %vm2276_vm5 = vcmp.gt.f32.partialorder %v1522_v2, %v1778_v40  ;;  %v1277_v49 = vld [vmem:[%s1503_s18 + $0x8] sm:$0xff] }
 0x367   : > { %v806_v26 = vpop.permute.xlu1 %805  ;;  %vm954_vm12 = vmand %vm2002_vm3, %vm946_vm0  ;;  %v919_v35 = vsel %vm911_vm10, %v1275_v9, 0.0  ;;  %vm944_vm0 = vcmp.eq.f32.partialorder %v856_v3, 3.0 }
 0x368   : > { %971 = vadd.xlane.f32.xlu0 %v961_v25  ;;  %vm2030_vm13 = vmand %vm1977_vm9, %vm943_vm6  ;;  %v962_v29 = vsel %vm954_vm12, %v1276_v22, 0.0  ;;  %v851_v2 = vmin.f32 %v1942_v50, %v806_v26  ;;  %vm869_vm6 = vcmp.eq.f32.partialorder %v2035_v15, 1.0 }
 0x369   : > { %933 = vadd.xlane.f32.xlu1 %v922_v30  ;;  %vm2042_vm3 = vmor %vm2276_vm5, %vm2018_vm1  ;;  %v959_v37 = vsel %vm2030_vm13, %v1275_v9, 0.0  ;;  %vm2291_vm13 = vcmp.gt.f32.partialorder %v1541_v7, %v1907_v42  ;;  %v1278_v42 = vld [vmem:[%s1503_s18 + $0x30] sm:$0xff] }
 0x36a   : > { %vm2048_vm9 = vmand %vm2042_vm3, %vm904_vm8 }
 0x36b   : > { %v811_v34 = vpop.permute.xlu1 %810  ;;  %vm2055_vm4 = vmand %vm556_vm2, %vm829_vm11  ;;  %v920_v51 = vsel %vm2048_vm9, %v1277_v49, 0.0  ;;  %vm827_vm11 = vcmp.le.f32.partialorder %v1942_v50, %v806_v26  ;;  %vm909_vm9 = vcmp.eq.f32.partialorder %v2035_v15, 2.0 }
 0x36c   : > { %927 = vadd.xlane.f32.xlu0 %v919_v35  ;;  %vm2064_vm1 = vmand %vm2042_vm3, %vm864_vm14 }
 0x36d   : > { %973 = vadd.xlane.f32.xlu1 %v962_v29  ;;  %vm2075_vm2 = vmand %vm2042_vm3, %vm944_vm0  ;;  %v880_v57 = vsel %vm2064_vm1, %v1277_v49, 0.0  ;;  %vm2294_vm0 = vcmp.eq.f32.partialorder %v1528_v4, %v1850_v10 }
 0x36e   : > { %vm2090_vm8 = vmor %vm548_vm15, %vm2055_vm4  ;;  %vm828_vm15 = vcmp.le.f32.partialorder %v1950_v55, %v811_v34  ;;  %v960_v6 = vsel %vm2075_vm2, %v1277_v49, 0.0 }
 0x36f   : > { %v821_v40 = vpop.permute.xlu1 %820  ;;  %vm835_vm4 = vmand %vm2294_vm0, %vm827_vm11 }
 0x370   : > { %vm830_vm10 = vcmp.le.f32.partialorder %v1944_v12, %v821_v40  ;;  %v854_v48 = vmin.f32 %v1944_v12, %v821_v40  ;;  %967 = vadd.xlane.f32.xlu0 %v959_v37  ;;  %v852_v12 = vmin.f32 %v1950_v55, %v811_v34  ;;  %v1279_v55 = vld [vmem:[%s1503_s18 + $0x38] sm:$0xff] }
 0x371   : > { %vm838_vm12 = vmand %vm557_vm7, %vm830_vm10  ;;  %929 = vadd.xlane.f32.xlu1 %v920_v51  ;;  %vm2295_vm10 = vcmp.eq.f32.partialorder %v1531_v5, %v1871_v28 }
 0x372   : > { %v862_v44 = vadd.f32 %v854_v48, %v1957_v11  ;;  %vm2099_vm7 = vmand %vm2090_vm8, %vm869_vm6  ;;  %v859_v11 = vadd.f32 %v851_v2, %v1948_v52  ;;  %v860_v50 = vadd.f32 %v852_v12, %v1954_v58 }
 0x373   : > { %vm2110_vm5 = vmor %vm2291_vm13, %vm838_vm12  ;;  %v885_v52 = vsel %vm2099_vm7, %v1278_v42, 0.0 }
 0x374   : > { %889 = vadd.xlane.f32.xlu0 %v880_v57  ;;  %vm870_vm3 = vcmp.eq.f32.partialorder %v862_v44, 1.0  ;;  %vm910_vm1 = vcmp.eq.f32.partialorder %v862_v44, 2.0  ;;  %vm2124_vm2 = vmand %vm2295_vm10, %vm828_vm15  ;;  %vm867_vm12 = vcmp.eq.f32.partialorder %v859_v11, 1.0  ;;  %vm2298_vm15 = vcmp.gt.f32.partialorder %v1528_v4, %v1850_v10  ;;  %v1280_v4 = vld [vmem:[%s1503_s18 + $0x20] sm:$0xff] }
 0x375   : > { %969 = vadd.xlane.f32.xlu1 %v960_v6  ;;  %vm878_vm14 = vmand %vm2110_vm5, %vm870_vm3  ;;  %vm868_vm7 = vcmp.eq.f32.partialorder %v860_v50, 1.0 }
 0x376   : > { %v886_v24 = vsel %vm878_vm14, %v1279_v55, 0.0  ;;  %vm917_vm6 = vmand %vm2090_vm8, %vm909_vm9  ;;  %vm2301_vm14 = vcmp.gt.f32.partialorder %v1531_v5, %v1871_v28 }
 0x377   : > { %vm918_vm11 = vmand %vm2110_vm5, %vm910_vm1  ;;  %v925_v43 = vsel %vm917_vm6, %v1278_v42, 0.0  ;;  %vm908_vm1 = vcmp.eq.f32.partialorder %v860_v50, 2.0  ;;  %vm947_vm6 = vcmp.eq.f32.partialorder %v859_v11, 3.0 }
 0x378   : > { %899 = vadd.xlane.f32.xlu0 %v885_v52  ;;  %vm2139_vm13 = vmor %vm2298_vm15, %vm835_vm4  ;;  %v926_v20 = vsel %vm918_vm11, %v1279_v55, 0.0  ;;  %vm907_vm4 = vcmp.eq.f32.partialorder %v859_v11, 2.0 }
 0x379   : > { %901 = vadd.xlane.f32.xlu1 %v886_v24  ;;  %vm875_vm3 = vmand %vm2139_vm13, %vm867_vm12  ;;  %vm948_vm12 = vcmp.eq.f32.partialorder %v860_v50, 3.0 }
 0x37a   : > { %vm2150_vm9 = vmor %vm2301_vm14, %vm2124_vm2  ;;  %v883_v10 = vsel %vm875_vm3, %v1280_v4, 0.0  ;;  %vm950_vm3 = vcmp.eq.f32.partialorder %v862_v44, 3.0 }
 0x37b   : > { %vm876_vm0 = vmand %vm2150_vm9, %vm868_vm7  ;;  %vm949_vm7 = vcmp.eq.f32.partialorder %v2035_v15, 3.0 }
 0x37c   : > { %939 = vadd.xlane.f32.xlu0 %v925_v43  ;;  %v884_v53 = vsel %vm876_vm0, %v1281_v8, 0.0  ;;  %vm915_vm10 = vmand %vm2139_vm13, %vm907_vm4 }
 0x37d   : > { %941 = vadd.xlane.f32.xlu1 %v926_v20  ;;  %vm916_vm2 = vmand %vm2150_vm9, %vm908_vm1  ;;  %v923_v5 = vsel %vm915_vm10, %v1280_v4, 0.0 }
 0x37e   : > { %v924_v28 = vsel %vm916_vm2, %v1281_v8, 0.0  ;;  %vm955_vm11 = vmand %vm2139_vm13, %vm947_vm6  ;;  %vm983_vm13 = vcmask 7168  }
 0x37f   : > { %vm956_vm15 = vmand %vm2150_vm9, %vm948_vm12  ;;  %v963_v14 = vsel %vm955_vm11, %v1280_v4, 0.0  ;;  %vm992_vm9 = vcmask 15360  }
 0x380   : > { %895 = vadd.xlane.f32.xlu0 %v883_v10  ;;  %v964_v61 = vsel %vm956_vm15, %v1281_v8, 0.0  ;;  %vm957_vm14 = vmand %vm2090_vm8, %vm949_vm7  ;;  %vm1001_vm8 = vcmask 23552  }
 0x381   : > { %897 = vadd.xlane.f32.xlu1 %v884_v53  ;;  %vm958_vm0 = vmand %vm2110_vm5, %vm950_vm3  ;;  %v965_v62 = vsel %vm957_vm14, %v1278_v42, 0.0 }
 0x382   : > { %v966_v32 = vsel %vm958_vm0, %v1279_v55, 0.0 }
 0x384   : > { %935 = vadd.xlane.f32.xlu0 %v923_v5 }
 0x385   : > { %937 = vadd.xlane.f32.xlu1 %v924_v28 }
 0x388   : > { %975 = vadd.xlane.f32.xlu0 %v963_v14 }
 0x389   : > { %977 = vadd.xlane.f32.xlu1 %v964_v61 }
 0x38c   : > { %979 = vadd.xlane.f32.xlu0 %v965_v62 }
 0x38d   : > { %981 = vadd.xlane.f32.xlu1 %v966_v32 }
 0x3e9   : > { %v892_v54 = vpop.xlane.xlu0 %891 }
 0x3ea   : > { %v888_v1 = vpop.xlane.xlu1 %887 }
 0x3ed   : > { %v932_v60 = vpop.xlane.xlu0 %931 }
 0x3ee   : > { %v894_v59 = vpop.xlane.xlu1 %893  ;;  %v986_v33 = vsel %vm983_vm13, %v892_v54, %v932_v60 }
 0x3f1   : > { %v972_v0 = vpop.xlane.xlu0 %971 }
 0x3f2   : > { %v995_v9 = vsel %vm992_vm9, %v986_v33, %v972_v0  ;;  %v934_v13 = vpop.xlane.xlu1 %933 }
 0x3f3   : > { %1004 = vst.msk [vmem:[%s2176_s8 + $0x10] sm:$0xff] %vm1001_vm8, %v995_v9  ;;  %v987_v39 = vsel %vm983_vm13, %v894_v59, %v934_v13 }
 0x3f5   : > { %v928_v31 = vpop.xlane.xlu0 %927 }
 0x3f6   : > { %v974_v45 = vpop.xlane.xlu1 %973  ;;  %v984_v22 = vsel %vm983_vm13, %v888_v1, %v928_v31 }
 0x3f7   : > { %v996_v21 = vsel %vm992_vm9, %v987_v39, %v974_v45 }
 0x3f8   : > { %1005 = vst.msk [vmem:[%s2176_s8 + $0x18] sm:$0xff] %vm1001_vm8, %v996_v21 }
 0x3f9   : > { %v968_v19 = vpop.xlane.xlu0 %967 }
 0x3fa   : > { %v993_v3 = vsel %vm992_vm9, %v984_v22, %v968_v19  ;;  %v930_v63 = vpop.xlane.xlu1 %929 }
 0x3fb   : > { %1002 = vst.msk [vmem:[%s2176_s8] sm:$0xff] %vm1001_vm8, %v993_v3 }
 0x3fd   : > { %v890_v25 = vpop.xlane.xlu0 %889 }
 0x3fe   : > { %v985_v26 = vsel %vm983_vm13, %v890_v25, %v930_v63  ;;  %v970_v27 = vpop.xlane.xlu1 %969 }
 0x3ff   : > { %v994_v30 = vsel %vm992_vm9, %v985_v26, %v970_v27 }
 0x400   : > { %1003 = vst.msk [vmem:[%s2176_s8 + $0x8] sm:$0xff] %vm1001_vm8, %v994_v30 }
 0x401   : > { %v900_v34 = vpop.xlane.xlu0 %899 }
 0x402   : > { %v902_v35 = vpop.xlane.xlu1 %901 }
 0x405   : > { %v940_v38 = vpop.xlane.xlu0 %939 }
 0x406   : > { %v942_v15 = vpop.xlane.xlu1 %941  ;;  %v990_v51 = vsel %vm983_vm13, %v900_v34, %v940_v38 }
 0x407   : > { %v991_v12 = vsel %vm983_vm13, %v902_v35, %v942_v15 }
 0x409   : > { %v896_v29 = vpop.xlane.xlu0 %895 }
 0x40a   : > { %v898_v46 = vpop.xlane.xlu1 %897 }
 0x40d   : > { %v936_v17 = vpop.xlane.xlu0 %935 }
 0x40e   : > { %v938_v36 = vpop.xlane.xlu1 %937  ;;  %v988_v2 = vsel %vm983_vm13, %v896_v29, %v936_v17 }
 0x40f   : > { %v989_v37 = vsel %vm983_vm13, %v898_v46, %v938_v36 }
 0x411   : > { %v976_v40 = vpop.xlane.xlu0 %975 }
 0x412   : > { %v997_v47 = vsel %vm992_vm9, %v988_v2, %v976_v40  ;;  %v978_v48 = vpop.xlane.xlu1 %977 }
 0x413   : > { %1006 = vst.msk [vmem:[%s2176_s8 + $0x20] sm:$0xff] %vm1001_vm8, %v997_v47  ;;  %v998_v49 = vsel %vm992_vm9, %v989_v37, %v978_v48 }
 0x414   : > { %1007 = vst.msk [vmem:[%s2176_s8 + $0x28] sm:$0xff] %vm1001_vm8, %v998_v49 }
 0x415   : > { %v980_v23 = vpop.xlane.xlu0 %979 }
 0x416   : > { %v999_v44 = vsel %vm992_vm9, %v990_v51, %v980_v23  ;;  %v982_v56 = vpop.xlane.xlu1 %981 }
 0x417   : > { %1008 = vst.msk [vmem:[%s2176_s8 + $0x30] sm:$0xff] %vm1001_vm8, %v999_v44  ;;  %v1000_v57 = vsel %vm992_vm9, %v991_v12, %v982_v56 }
 0x418   : > { %1009 = vst.msk [vmem:[%s2176_s8 + $0x38] sm:$0xff] %vm1001_vm8, %v1000_v57 }
 0x419 PF: > { %p13_p7 = scmp.ge.s32.totalorder %s1447_s20, 4   ;;  %s2304_s9 = smov %s1366_s10 }
 0x41a   : > { %s2305_s10 = smov %s1370_s11  ;;  %s2306_s11 = smov %s1464_s28 }
 0x41b   : > { %s2307_s12 = smov %s1447_s20  ;;  %15 = sbr.rel (!%p13_p7) target bundleno = 4 (0x4), region = 72 }
 0x420   :  { %1032 = vsyncpa [#allocation3], 1 }
 0x421   :  { %1034 = vsyncpa [#allocation3 + $0x1], 1 }
 0x422   :  { %1035 = vsyncpa [#allocation5], 1 }

// kernel: tpu_custom_call.1
= control target key start
LH: loop header
LB: loop body
LE: loop exit
PB: predicated region body
PF: predicated region fallthrough
CT: control target
= control target key end

     0   :  { %7 = vsyncpa [#allocation3], 0  ;;  %s2223_s0 = inlined_call_operand.hbm [shape: f32[128,128], index: 0, kind: input, shape index: {}]   ;;  %s2224_s1 = inlined_call_operand.hbm [shape: bf16[128,128], index: 1, kind: input, shape index: {}]   ;;  %s2225_s2 = inlined_call_operand.vmem [shape: f32[128,3], index: 2, kind: output, shape index: {}]  }
   0x1   :  { %9 = vsyncpa [#allocation3 + $0x1], 0 }
   0x2   :  { %10 = vsyncpa [#allocation5], 0  ;;  %s1400_s9 = smov 0   ;;  %s1402_s10 = smov 0  }
   0x3   :  { %s1404_s11 = smov 0   ;;  %s1406_s12 = smov 0  }
   0x4 LB: > { %s1087_s13 = sadd.s32 4294967295, %s1374_s12   ;;  %p36_p0 = scmp.ne.s32.totalorder %s1366_s10, %s1362_s9  ;;  %s1374_s12 = sphi %s1406_s12, %s2307_s12   ;;  %s1370_s11 = sphi %s1404_s11, %s2306_s11   ;;  %s1366_s10 = sphi %s1402_s10, %s2305_s10   ;;  %s1362_s9 = sphi %s1400_s9, %s2304_s9  }
   0x5   : > { %p1422_p1 = scmp.eq.s32.totalorder %s1087_s13, 0  ;;  %p1089_p2 = scmp.ge.s32.totalorder %s1374_s12, 1 }
   0x6   : > { %p94_p3 = scmp.lt.s32.totalorder %s1374_s12, 3  ;;  %s1376_s17 = smov [#allocation4]  }
   0x7   : > { %s2241_s14 = scalar_select %p1422_p1, 1, 0 }
   0x8   : > { %p1430_p4 = por %p1422_p1, %p36_p0  ;;  %p1434_p5 = pnand %p1089_p2, %p94_p3 }
   0x9   : > { %s106_s18 = sshll.u32 %s1376_s17, 4  ;;  %s1447_s20 = sadd.s32 1, %s1374_s12   ;;  %s107_s18 = int_to_ptr.vmem [resolvable:$true] %s106_s18 }
   0xa   : > { %s2242_s15 = scalar_select %p1430_p4, 1, 0 }
   0xb   : > { %s2243_s16 = scalar_select %p1434_p5, 1, 0 }
   0xc   : > { %p1213_p6 = pneg %p1434_p5  ;;  %s23_s21 = sadd.s32 1, %s1370_s11 }
   0xd   : > { %s20_s22 = ssub.s32 %s1374_s12, %s1447_s20  ;;  %s1293_s23 = scalar_lea.vmem %s107_s18, 1024 }
   0xe   : > { %p1442_p7 = pnand %p1213_p6, %p1422_p1  ;;  %p1294_p9 = scmp.ne.s32.totalorder %s107_s18, %s1293_s23 }
   0xf   : > { %p1301_p12 = scmp.lt.s32.totalorder %s107_s18, %s107_s18  ;;  %p1302_p13 = scmp.lt.s32.totalorder %s1293_s23, %s1293_s23 }
  0x10   : > { %p1284_p8 = pneg %p1442_p7 }
  0x11   : > { %p1303_p0 = por %p1302_p13, %p1301_p12 }
  0x12   : > { %p1296_p10 = pnand %p1294_p9, %p1284_p8 }
  0x14   : > { %p1297_p11 = pneg %p1296_p10 }
  0x16   : > { %p1304_p2 = pnand %p1303_p0, %p1297_p11 }
  0x18   : > { %1307 = shalt.err (!%p1304_p2)
}
  0x19   : > { %s1377_s24 = smov 64   ;;  %s1378_s25 = smov 4  }
  0x1a   : > { %1216 = dma.hbm_to_vmem [thread:$0]  (!%p1442_p7), %s2224_s1, 1024, %s107_s18, [#allocation5], %s1377_s24, %s1377_s24, %s1378_s25  }
  0x1b   : > { %p21_p3 = scmp.eq.s32.totalorder %s20_s22, 0  ;;  %p30_p6 = scmp.ne.s32.totalorder %s1370_s11, %s1366_s10 }
  0x1c   : > { %p31_p8 = scmp.eq.s32.totalorder %s1374_s12, 0  ;;  %p1222_p9 = scmp.lt.s32.totalorder %s1374_s12, 2 }
  0x1d   : > { %s1464_s28 = scalar_select %p21_p3, %s1370_s11, %s23_s21  }
  0x1e   : > { %p32_p10 = por %p31_p8, %p30_p6  ;;  %s120_s29 = sand.u32 1, %s1370_s11  }
  0x1f   : > { %s1092_s30 = sshll.u32 %s120_s29, 6  ;;  %s1142_s3 = sshll.u32 %s1374_s12, 10 }
  0x20   : > { %s1471_s6 = scalar_lea.hbm %s2223_s0, %s1142_s3  ;;  %s124_s7 = scalar_lea.vmem [#allocation2], %s1092_s30 }
  0x21   : > { %s131_s8 = sshll.u32 %s124_s7, 4  ;;  %p1475_p7 = pnand %p1222_p9, %p32_p10  ;;  %s1473_s8 = int_to_ptr.vmem [resolvable:$true] %s131_s8 }
  0x22   : > { %s1479_s17 = scalar_lea.sflag [#allocation3], %s120_s29  ;;  %s1308_s18 = scalar_lea.hbm %s1471_s6, 1024 }
  0x23   : > { %p1309_p11 = scmp.ne.s32.totalorder %s1471_s6, %s1308_s18  ;;  %p1310_p12 = pneg %p1475_p7 }
  0x24   : > { %s1313_s22 = scalar_lea.hbm %s2223_s0, 2048  ;;  %p1314_p2 = scmp.lt.s32.totalorder %s1471_s6, %s2223_s0 }
  0x25   : > { %p1311_p13 = pnand %p1310_p12, %p1309_p11  ;;  %p1315_p3 = scmp.lt.s32.totalorder %s1313_s22, %s1308_s18 }
  0x27   : > { %p1312_p0 = pneg %p1311_p13  ;;  %p1316_p6 = por %p1315_p3, %p1314_p2 }
  0x29   : > { %p1317_p8 = pnand %p1316_p6, %p1312_p0 }
  0x2b   : > { %1320 = shalt.err (!%p1317_p8)
}
  0x2c   : > { %s1321_s25 = scalar_lea.vmem %s1473_s8, 1024  ;;  %s1379_s26 = smov [#allocation2]  }
  0x2d   : > { %p1322_p9 = scmp.ne.s32.totalorder %s1473_s8, %s1321_s25  ;;  %s1326_s27 = sshll.u32 %s1379_s26, 4  ;;  %s1327_s27 = int_to_ptr.vmem [resolvable:$false] %s1326_s27 }
  0x2e   : > { %s1328_s29 = scalar_lea.vmem %s1327_s27, 2048  ;;  %p1329_p13 = scmp.lt.s32.totalorder %s1473_s8, %s1327_s27 }
  0x2f   : > { %p1324_p10 = pnand %p1322_p9, %p1310_p12  ;;  %p1330_p1 = scmp.lt.s32.totalorder %s1328_s29, %s1321_s25 }
  0x31   : > { %p1325_p11 = pneg %p1324_p10  ;;  %p1331_p4 = por %p1330_p1, %p1329_p13 }
  0x33   : > { %p1332_p5 = pnand %p1331_p4, %p1325_p11 }
  0x35   : > { %1335 = shalt.err (!%p1332_p5)
}
  0x36   : > { %s1380_s30 = smov 128   ;;  %s1381_s3 = smov 8  }
  0x37   : > { %1220 = dma.hbm_to_vmem [thread:$0]  (!%p1475_p7), %s1471_s6, 1024, %s1473_s8, %s1479_s17, %s1380_s30, %s1380_s30, %s1381_s3  }
  0x38   : > { %p2246_p12 = scmp.ne.s32.totalorder %s2243_s16, 0 }
  0x39   : > { %s145_s4 = sand.u32 (!%p2246_p12), 1, %s1366_s10   ;;  %p2247_p1 = scmp.ne.s32.totalorder (!%p2246_p12), %s2242_s15, 0 }
  0x3a   : > { %143 = sbr.rel (%p2246_p12) target bundleno = 1049 (0x419), region = 28  ;;  %s1096_s5 = sshll.u32 (!%p2246_p12), %s145_s4, 6 }
  0x3b   : > { %s146_s7 = scalar_lea.sflag (!%p2246_p12), [#allocation3], %s145_s4  ;;  %s1503_s18 = scalar_lea.vmem (!%p2246_p12), [#allocation2], %s1096_s5 }
  0x3f   : > { %1353 = dma.done.wait (%p2247_p1), %s146_s7, 1024  }
  0x40   : > { %1355 = vsyncadd (%p2247_p1), %s146_s7, 4294966272  ;;  %p2248_p4 = scmp.ne.s32.totalorder %s2241_s14, 0 }
  0x42   : > { %1357 = dma.done.wait (%p2248_p4), [#allocation5], 1024  }
  0x43   : > { %1359 = vsyncadd (%p2248_p4), [#allocation5], 4294966272  ;;  %v1514_v0 = vld [vmem:[%s1503_s18] sm:$0xff]  ;;  %v1517_v1 = vld [vmem:[%s1503_s18 + $0x10] sm:$0xff]  ;;  %v1382_v19 = vmov 0   ;;  %s1098_s14 = sshll.u32 %s1087_s13, 3 }
  0x44   : > { %190 = vmax.xlane.f32.xlu0 %v1514_v0  ;;  %194 = vmax.xlane.f32.xlu1 %v1517_v1  ;;  %v1522_v2 = vld [vmem:[%s1503_s18 + $0x8] sm:$0xff]  ;;  %v1525_v3 = vld [vmem:[%s1503_s18 + $0x18] sm:$0xff]  ;;  %v1528_v4 = vld [vmem:[%s1503_s18 + $0x20] sm:$0xff]  ;;  %p176_p5 = scmp.lt.s32.totalorder %s1098_s14, 15 }
  0x45   : > { %v1531_v5 = vld [vmem:[%s1503_s18 + $0x28] sm:$0xff]  ;;  %v1538_v6 = vld [vmem:[%s1503_s18 + $0x30] sm:$0xff]  ;;  %v1541_v7 = vld [vmem:[%s1503_s18 + $0x38] sm:$0xff] }
  0x46   : > { %s2309_s14 = smov (!%p176_p5, %s1098_s14), 15 }
  0x47   : > { %s1099_s15 = sshll.u32 %s2309_s14, 3 }
  0x48   : > { %192 = vmax.xlane.f32.xlu0 %v1522_v2  ;;  %196 = vmax.xlane.f32.xlu1 %v1525_v3  ;;  %s2176_s8 = scalar_lea.vmem %s2225_s2, %s1099_s15 }
  0x4c   : > { %198 = vmax.xlane.f32.xlu0 %v1528_v4  ;;  %200 = vmax.xlane.f32.xlu1 %v1531_v5 }
  0x50   : > { %202 = vmax.xlane.f32.xlu0 %v1538_v6  ;;  %204 = vmax.xlane.f32.xlu1 %v1541_v7 }
  0xcd   : > { %v1545_v8 = vpop.xlane.xlu0 %190  ;;  %v1547_v9 = vpop.xlane.xlu1 %194 }
  0xce   : > { %vm334_vm0 = vcmp.lt.f32.partialorder %v1514_v0, %v1545_v8  ;;  %vm336_vm1 = vcmp.lt.f32.partialorder %v1517_v1, %v1547_v9  ;;  %vm206_vm4 = vcmp.eq.f32.partialorder %v1514_v0, %v1545_v8  ;;  %vm208_vm7 = vcmp.eq.f32.partialorder %v1517_v1, %v1547_v9 }
  0xcf   : > { %v342_v10 = vsel %vm334_vm0, %v1514_v0, -inf  ;;  %v344_v12 = vsel %vm336_vm1, %v1517_v1, -inf  ;;  %v214_v20 = vsel %vm206_vm4, 1, %v1382_v19  ;;  %v216_v27 = vsel %vm208_vm7, 1, %v1382_v19 }
  0xd0   : > { %350 = vmax.xlane.f32.xlu0 %v342_v10  ;;  %v223_v24 = vshrl.u32 %v214_v20, 16  ;;  %v247_v31 = vshrl.u32 %v216_v27, 16  ;;  %v222_v36 = vand.u32 65535, %v214_v20  ;;  %v246_v40 = vand.u32 65535, %v216_v27 }
  0xd1   : > { %v1554_v11 = vpop.xlane.xlu0 %192  ;;  %v1557_v13 = vpop.xlane.xlu1 %196 }
  0xd2   : > { %vm335_vm2 = vcmp.lt.f32.partialorder %v1522_v2, %v1554_v11  ;;  %vm337_vm3 = vcmp.lt.f32.partialorder %v1525_v3, %v1557_v13  ;;  %vm207_vm8 = vcmp.eq.f32.partialorder %v1522_v2, %v1554_v11  ;;  %vm209_vm11 = vcmp.eq.f32.partialorder %v1525_v3, %v1557_v13 }
  0xd3   : > { %v343_v14 = vsel %vm335_vm2, %v1522_v2, -inf  ;;  %v345_v16 = vsel %vm337_vm3, %v1525_v3, -inf  ;;  %v215_v26 = vsel %vm207_vm8, 1, %v1382_v19  ;;  %v225_v29 = vcvt.s32.f32 %v223_v24 }
  0xd4   : > { %354 = vmax.xlane.f32.xlu0 %v344_v12  ;;  %352 = vmax.xlane.f32.xlu1 %v343_v14  ;;  %v235_v30 = vshrl.u32 %v215_v26, 16  ;;  %v217_v32 = vsel %vm209_vm11, 1, %v1382_v19  ;;  %v249_v34 = vcvt.s32.f32 %v247_v31  ;;  %v224_v38 = vcvt.s32.f32 %v222_v36 }
  0xd5   : > { %v1566_v15 = vpop.xlane.xlu0 %198  ;;  %v1569_v17 = vpop.xlane.xlu1 %200  ;;  %v259_v35 = vshrl.u32 %v217_v32, 16  ;;  %v234_v39 = vand.u32 65535, %v215_v26  ;;  %v248_v43 = vcvt.s32.f32 %v246_v40  ;;  %v258_v44 = vand.u32 65535, %v217_v32 }
  0xd6   : > { %vm338_vm5 = vcmp.lt.f32.partialorder %v1528_v4, %v1566_v15  ;;  %vm339_vm6 = vcmp.lt.f32.partialorder %v1531_v5, %v1569_v17  ;;  %v237_v33 = vcvt.s32.f32 %v235_v30  ;;  %vm210_vm12 = vcmp.eq.f32.partialorder %v1528_v4, %v1566_v15 }
  0xd7   : > { %v346_v18 = vsel %vm338_vm5, %v1528_v4, -inf  ;;  %v347_v22 = vsel %vm339_vm6, %v1531_v5, -inf  ;;  %v261_v37 = vcvt.s32.f32 %v259_v35  ;;  %v218_v41 = vsel %vm210_vm12, 1, %v1382_v19 }
  0xd8   : > { %356 = vmax.xlane.f32.xlu1 %v345_v16  ;;  %358 = vmax.xlane.f32.xlu0 %v346_v18  ;;  %vm211_vm13 = vcmp.eq.f32.partialorder %v1531_v5, %v1569_v17  ;;  %v236_v42 = vcvt.s32.f32 %v234_v39  ;;  %v271_v45 = vshrl.u32 %v218_v41, 16  ;;  %v260_v48 = vcvt.s32.f32 %v258_v44 }
  0xd9   : > { %v1581_v21 = vpop.xlane.xlu0 %202  ;;  %v1584_v23 = vpop.xlane.xlu1 %204  ;;  %v219_v46 = vsel %vm211_vm13, 1, %v1382_v19  ;;  %v270_v56 = vand.u32 65535, %v218_v41 }
  0xda   : > { %vm340_vm9 = vcmp.lt.f32.partialorder %v1538_v6, %v1581_v21  ;;  %vm341_vm10 = vcmp.lt.f32.partialorder %v1541_v7, %v1584_v23  ;;  %vm212_vm14 = vcmp.eq.f32.partialorder %v1538_v6, %v1581_v21  ;;  %vm213_vm15 = vcmp.eq.f32.partialorder %v1541_v7, %v1584_v23 }
  0xdb   : > { %v348_v25 = vsel %vm340_vm9, %v1538_v6, -inf  ;;  %v349_v28 = vsel %vm341_vm10, %v1541_v7, -inf  ;;  %v220_v47 = vsel %vm212_vm14, 1, %v1382_v19  ;;  %v273_v49 = vcvt.s32.f32 %v271_v45 }
  0xdc   : > { %360 = vmax.xlane.f32.xlu1 %v347_v22  ;;  %362 = vmax.xlane.f32.xlu0 %v348_v25  ;;  %v283_v50 = vshrl.u32 %v219_v46, 16  ;;  %v295_v51 = vshrl.u32 %v220_v47, 16  ;;  %v221_v52 = vsel %vm213_vm15, 1, %v1382_v19  ;;  %v272_v58 = vcvt.s32.f32 %v270_v56 }
  0xdd   : > { %v307_v55 = vshrl.u32 %v221_v52, 16  ;;  %v282_v59 = vand.u32 65535, %v219_v46  ;;  %v294_v60 = vand.u32 65535, %v220_v47  ;;  %v306_v63 = vand.u32 65535, %v221_v52 }
  0xde   : > { %v285_v53 = vcvt.s32.f32 %v283_v50  ;;  %v297_v54 = vcvt.s32.f32 %v295_v51 }
  0xdf   : > { %v309_v57 = vcvt.s32.f32 %v307_v55  ;;  %v284_v61 = vcvt.s32.f32 %v282_v59  ;;  %v296_v62 = vcvt.s32.f32 %v294_v60  ;;  %v308_v10 = vcvt.s32.f32 %v306_v63 }
  0xe0   : > { %364 = vmax.xlane.f32.xlu1 %v349_v28  ;;  %228 = vadd.xlane.f32.xlu0 %v225_v29 }
  0xe4   : > { %240 = vadd.xlane.f32.xlu1 %v237_v33  ;;  %252 = vadd.xlane.f32.xlu0 %v249_v34 }
  0xe8   : > { %264 = vadd.xlane.f32.xlu1 %v261_v37  ;;  %226 = vadd.xlane.f32.xlu0 %v224_v38 }
  0xec   : > { %238 = vadd.xlane.f32.xlu1 %v236_v42  ;;  %250 = vadd.xlane.f32.xlu0 %v248_v43 }
  0xf0   : > { %262 = vadd.xlane.f32.xlu1 %v260_v48  ;;  %276 = vadd.xlane.f32.xlu0 %v273_v49 }
  0xf4   : > { %288 = vadd.xlane.f32.xlu1 %v285_v53  ;;  %300 = vadd.xlane.f32.xlu0 %v297_v54 }
  0xf8   : > { %312 = vadd.xlane.f32.xlu1 %v309_v57  ;;  %274 = vadd.xlane.f32.xlu0 %v272_v58 }
  0xfc   : > { %286 = vadd.xlane.f32.xlu1 %v284_v61  ;;  %298 = vadd.xlane.f32.xlu0 %v296_v62 }
 0x100   : > { %310 = vadd.xlane.f32.xlu1 %v308_v10 }
 0x159   : > { %v1609_v12 = vpop.xlane.xlu0 %350 }
 0x15a   : > { %vm366_vm0 = vcmp.eq.f32.partialorder %v1514_v0, %v1609_v12 }
 0x15b   : > { %v374_v14 = vsel %vm366_vm0, 1, %v1382_v19 }
 0x15c   : > { %v383_v16 = vshrl.u32 %v374_v14, 16  ;;  %v382_v30 = vand.u32 65535, %v374_v14 }
 0x15d   : > { %v1614_v18 = vpop.xlane.xlu1 %352  ;;  %v1616_v20 = vpop.xlane.xlu0 %354 }
 0x15e   : > { %vm367_vm1 = vcmp.eq.f32.partialorder %v1522_v2, %v1614_v18  ;;  %vm368_vm2 = vcmp.eq.f32.partialorder %v1517_v1, %v1616_v20  ;;  %v385_v22 = vcvt.s32.f32 %v383_v16  ;;  %v384_v38 = vcvt.s32.f32 %v382_v30 }
 0x15f   : > { %v375_v24 = vsel %vm367_vm1, 1, %v1382_v19  ;;  %v376_v25 = vsel %vm368_vm2, 1, %v1382_v19 }
 0x160   : > { %388 = vadd.xlane.f32.xlu0 %v385_v22  ;;  %v395_v26 = vshrl.u32 %v375_v24, 16  ;;  %v407_v27 = vshrl.u32 %v376_v25, 16  ;;  %v394_v40 = vand.u32 65535, %v375_v24  ;;  %v406_v41 = vand.u32 65535, %v376_v25 }
 0x161   : > { %v1624_v28 = vpop.xlane.xlu1 %356  ;;  %v1626_v29 = vpop.xlane.xlu0 %358 }
 0x162   : > { %vm369_vm3 = vcmp.eq.f32.partialorder %v1525_v3, %v1624_v28  ;;  %vm370_vm4 = vcmp.eq.f32.partialorder %v1528_v4, %v1626_v29  ;;  %v397_v31 = vcvt.s32.f32 %v395_v26  ;;  %v409_v32 = vcvt.s32.f32 %v407_v27 }
 0x163   : > { %v377_v33 = vsel %vm369_vm3, 1, %v1382_v19  ;;  %v378_v35 = vsel %vm370_vm4, 1, %v1382_v19  ;;  %v396_v46 = vcvt.s32.f32 %v394_v40  ;;  %v408_v47 = vcvt.s32.f32 %v406_v41 }
 0x164   : > { %400 = vadd.xlane.f32.xlu1 %v397_v31  ;;  %412 = vadd.xlane.f32.xlu0 %v409_v32  ;;  %v419_v34 = vshrl.u32 %v377_v33, 16  ;;  %v431_v42 = vshrl.u32 %v378_v35, 16  ;;  %v418_v48 = vand.u32 65535, %v377_v33  ;;  %v430_v59 = vand.u32 65535, %v378_v35  ;;  %v1266_v33 = vld [vmem:[#allocation4 + $0x38] sm:$0xff]  }
 0x165   : > { %v1634_v36 = vpop.xlane.xlu1 %360  ;;  %v1636_v37 = vpop.xlane.xlu0 %362  ;;  %1191 = vmatprep.subr.bf16.mxu1 %v1266_v33  ;;  %1159 = vmatprep.subr.bf16.mxu0 %v1266_v33 }
 0x166   : > { %vm372_vm5 = vcmp.eq.f32.partialorder %v1538_v6, %v1636_v37  ;;  %v421_v39 = vcvt.s32.f32 %v419_v34  ;;  %vm371_vm6 = vcmp.eq.f32.partialorder %v1531_v5, %v1634_v36  ;;  %v433_v50 = vcvt.s32.f32 %v431_v42  ;;  %1199 = vmatpush3.bf16.msra.mxu1 %v1266_v33  ;;  %1160 = vmatpush3.bf16.msra.mxu0 %v1266_v33 }
 0x167   : > { %v380_v43 = vsel %vm372_vm5, 1, %v1382_v19  ;;  %v379_v49 = vsel %vm371_vm6, 1, %v1382_v19  ;;  %v420_v56 = vcvt.s32.f32 %v418_v48 }
 0x168   : > { %424 = vadd.xlane.f32.xlu1 %v421_v39  ;;  %386 = vadd.xlane.f32.xlu0 %v384_v38  ;;  %v455_v51 = vshrl.u32 %v380_v43, 16  ;;  %v443_v57 = vshrl.u32 %v379_v49, 16  ;;  %v442_v31 = vand.u32 65535, %v379_v49  ;;  %v454_v32 = vand.u32 65535, %v380_v43 }
 0x169   : > { %v1643_v44 = vpop.xlane.xlu1 %364  ;;  %v229_v45 = vpop.xlane.xlu0 %228 }
 0x16a   : > { %vm373_vm7 = vcmp.eq.f32.partialorder %v1541_v7, %v1643_v44  ;;  %v231_v55 = vcvt.f32.s32 %v229_v45  ;;  %v457_v58 = vcvt.s32.f32 %v455_v51  ;;  %v445_v22 = vcvt.s32.f32 %v443_v57 }
 0x16b   : > { %v1649_v54 = vsel %vm373_vm7, 1, %v1382_v19  ;;  %v432_v19 = vcvt.s32.f32 %v430_v59  ;;  %v456_v48 = vcvt.s32.f32 %v454_v32 }
 0x16c   : > { %398 = vadd.xlane.f32.xlu1 %v396_v46  ;;  %410 = vadd.xlane.f32.xlu0 %v408_v47  ;;  %v467_v63 = vshrl.u32 %v1649_v54, 16  ;;  %v232_v10 = vshll.u32 %v231_v55, 16  ;;  %v444_v46 = vcvt.s32.f32 %v442_v31  ;;  %v1267_v47 = vld [vmem:[#allocation4 + $0x30] sm:$0xff]   ;;  %v466_v49 = vand.u32 65535, %v1649_v54  ;;  %v1268_v55 = vld [vmem:[#allocation4 + $0x28] sm:$0xff]  }
 0x16d   : > { %v241_v52 = vpop.xlane.xlu1 %240  ;;  %v253_v53 = vpop.xlane.xlu0 %252  ;;  %1192 = vmatprep.subr.bf16.mxu1 %v1267_v47  ;;  %1161 = vmatprep.subr.bf16.mxu0 %v1267_v47 }
 0x16e   : > { %v243_v60 = vcvt.f32.s32 %v241_v52  ;;  %v255_v14 = vcvt.f32.s32 %v253_v53  ;;  %v469_v30 = vcvt.s32.f32 %v467_v63  ;;  %1200 = vmatpush3.bf16.msra.mxu1 %v1267_v47  ;;  %1162 = vmatpush3.bf16.msra.mxu0 %v1267_v47  ;;  %v468_v57 = vcvt.s32.f32 %v466_v49 }
 0x16f   : > { %1193 = vmatprep.subr.bf16.mxu1 %v1268_v55  ;;  %1163 = vmatprep.subr.bf16.mxu0 %v1268_v55 }
 0x170   : > { %422 = vadd.xlane.f32.xlu1 %v420_v56  ;;  %436 = vadd.xlane.f32.xlu0 %v433_v50  ;;  %v244_v25 = vshll.u32 %v243_v60, 16  ;;  %v256_v34 = vshll.u32 %v255_v14, 16 }
 0x171   : > { %v265_v61 = vpop.xlane.xlu1 %264  ;;  %v227_v62 = vpop.xlane.xlu0 %226 }
 0x172   : > { %v230_v16 = vcvt.f32.s32 %v227_v62  ;;  %v267_v39 = vcvt.f32.s32 %v265_v61  ;;  %1201 = vmatpush3.bf16.msra.mxu1 %v1268_v55  ;;  %1164 = vmatpush3.bf16.msra.mxu0 %v1268_v55 }
 0x174   : > { %v1652_v24 = vadd.s32 %v232_v10, %v230_v16  ;;  %448 = vadd.xlane.f32.xlu1 %v445_v22  ;;  %460 = vadd.xlane.f32.xlu0 %v457_v58  ;;  %v268_v50 = vshll.u32 %v267_v39, 16  ;;  %v1270_v22 = vld [vmem:[#allocation4 + $0x18] sm:$0xff]  }
 0x175   : > { %v239_v26 = vpop.xlane.xlu1 %238  ;;  %v251_v27 = vpop.xlane.xlu0 %250 }
 0x176   : > { %vm318_vm8 = vcmp.ge.s32.totalorder %v1652_v24, 3  ;;  %v242_v35 = vcvt.f32.s32 %v239_v26  ;;  %v254_v38 = vcvt.f32.s32 %v251_v27 }
 0x177   : > { %v1663_v43 = vsel %vm318_vm8, %v1545_v8, %v1609_v12 }
 0x178   : > { %v1655_v40 = vadd.s32 %v244_v25, %v242_v35  ;;  %v1657_v41 = vadd.s32 %v256_v34, %v254_v38  ;;  %472 = vadd.xlane.f32.xlu1 %v469_v30  ;;  %434 = vadd.xlane.f32.xlu0 %v432_v19  ;;  %vm502_vm11 = vcmp.lt.f32.partialorder %v1514_v0, %v1663_v43  ;;  %v1271_v38 = vld [vmem:[#allocation4 + $0x10] sm:$0xff]  }
 0x179   : > { %v263_v42 = vpop.xlane.xlu1 %262  ;;  %v277_v45 = vpop.xlane.xlu0 %276  ;;  %v510_v58 = vsel %vm502_vm11, %v1514_v0, -inf }
 0x17a   : > { %vm319_vm9 = vcmp.ge.s32.totalorder %v1655_v40, 3  ;;  %vm320_vm10 = vcmp.ge.s32.totalorder %v1657_v41, 3  ;;  %v266_v51 = vcvt.f32.s32 %v263_v42  ;;  %v279_v56 = vcvt.f32.s32 %v277_v45 }
 0x17b   : > { %v1676_v53 = vsel %vm319_vm9, %v1554_v11, %v1614_v18  ;;  %v1682_v54 = vsel %vm320_vm10, %v1547_v9, %v1616_v20  ;;  %v1269_v9 = vld [vmem:[#allocation4 + $0x20] sm:$0xff]  }
 0x17c   : > { %446 = vadd.xlane.f32.xlu1 %v444_v46  ;;  %458 = vadd.xlane.f32.xlu0 %v456_v48  ;;  %v1670_v8 = vadd.s32 %v268_v50, %v266_v51  ;;  %vm503_vm13 = vcmp.lt.f32.partialorder %v1522_v2, %v1676_v53  ;;  %vm504_vm14 = vcmp.lt.f32.partialorder %v1517_v1, %v1682_v54  ;;  %v280_v60 = vshll.u32 %v279_v56, 16 }
 0x17d   : > { %v289_v12 = vpop.xlane.xlu1 %288  ;;  %v301_v52 = vpop.xlane.xlu0 %300  ;;  %1194 = vmatprep.subr.bf16.mxu1 %v1269_v9  ;;  %1165 = vmatprep.subr.bf16.mxu0 %v1269_v9  ;;  %v511_v63 = vsel %vm503_vm13, %v1522_v2, -inf  ;;  %v512_v10 = vsel %vm504_vm14, %v1517_v1, -inf }
 0x17e   : > { %vm321_vm12 = vcmp.ge.s32.totalorder %v1670_v8, 3  ;;  %v291_v11 = vcvt.f32.s32 %v289_v12  ;;  %v303_v61 = vcvt.f32.s32 %v301_v52  ;;  %1202 = vmatpush3.bf16.msra.mxu1 %v1269_v9  ;;  %1166 = vmatpush3.bf16.msra.mxu0 %v1269_v9 }
 0x17f   : > { %v1694_v59 = vsel %vm321_vm12, %v1557_v13, %v1624_v28  ;;  %1195 = vmatprep.subr.bf16.mxu1 %v1270_v22  ;;  %1167 = vmatprep.subr.bf16.mxu0 %v1270_v22 }
 0x180   : > { %470 = vadd.xlane.f32.xlu1 %v468_v57  ;;  %518 = vmax.xlane.f32.xlu0 %v510_v58  ;;  %vm505_vm15 = vcmp.lt.f32.partialorder %v1525_v3, %v1694_v59  ;;  %v292_v13 = vshll.u32 %v291_v11, 16  ;;  %v304_v19 = vshll.u32 %v303_v61, 16 }
 0x181   : > { %v313_v18 = vpop.xlane.xlu1 %312  ;;  %v275_v20 = vpop.xlane.xlu0 %274  ;;  %v513_v30 = vsel %vm505_vm15, %v1525_v3, -inf }
 0x182   : > { %v278_v62 = vcvt.f32.s32 %v275_v20  ;;  %v315_v27 = vcvt.f32.s32 %v313_v18  ;;  %1203 = vmatpush3.bf16.msra.mxu1 %v1270_v22  ;;  %1168 = vmatpush3.bf16.msra.mxu0 %v1270_v22 }
 0x183   : > { %1196 = vmatprep.subr.bf16.mxu1 %v1271_v38  ;;  %1169 = vmatprep.subr.bf16.mxu0 %v1271_v38 }
 0x184   : > { %v1698_v14 = vadd.s32 %v280_v60, %v278_v62  ;;  %520 = vmax.xlane.f32.xlu1 %v511_v63  ;;  %522 = vmax.xlane.f32.xlu0 %v512_v10 }
 0x185   : > { %v287_v28 = vpop.xlane.xlu1 %286  ;;  %v299_v16 = vpop.xlane.xlu0 %298 }
 0x186   : > { %vm322_vm0 = vcmp.ge.s32.totalorder %v1698_v14, 3  ;;  %v290_v25 = vcvt.f32.s32 %v287_v28  ;;  %v302_v26 = vcvt.f32.s32 %v299_v16  ;;  %1204 = vmatpush3.bf16.msra.mxu1 %v1271_v38  ;;  %1170 = vmatpush3.bf16.msra.mxu0 %v1271_v38  ;;  %v327_v38 = vsub.s32 3, %v1655_v40 }
 0x187   : > { %v1708_v31 = vsel %vm322_vm0, %v1566_v15, %v1626_v29  ;;  %v316_v15 = vshll.u32 %v315_v27, 16 }
 0x188   : > { %v1710_v32 = vadd.s32 %v292_v13, %v290_v25  ;;  %v1712_v33 = vadd.s32 %v304_v19, %v302_v26  ;;  %524 = vmax.xlane.f32.xlu1 %v513_v30  ;;  %vm506_vm1 = vcmp.lt.f32.partialorder %v1528_v4, %v1708_v31  ;;  %v326_v25 = vsub.s32 3, %v1652_v24 }
 0x189   : > { %v311_v34 = vpop.xlane.xlu1 %310  ;;  %v514_v35 = vsel %vm506_vm1, %v1528_v4, -inf }
 0x18a   : > { %vm323_vm2 = vcmp.ge.s32.totalorder %v1710_v32, 3  ;;  %vm2231_vm3 = vcmp.ge.s32.totalorder %v1712_v33, 3  ;;  %526 = vmax.xlane.f32.xlu0 %v514_v35  ;;  %v314_v29 = vcvt.f32.s32 %v311_v34 }
 0x18b   : > { %v1723_v39 = vsel %vm323_vm2, %v1569_v17, %v1634_v36  ;;  %v1729_v42 = vsel %vm2231_vm3, %v1581_v21, %v1636_v37  ;;  %v1272_v36 = vld [vmem:[#allocation4 + $0x8] sm:$0xff]   ;;  %v1273_v37 = vld [vmem:[#allocation4] sm:$0xff]  }
 0x18c   : > { %vm507_vm4 = vcmp.lt.f32.partialorder %v1531_v5, %v1723_v39  ;;  %vm508_vm5 = vcmp.lt.f32.partialorder %v1538_v6, %v1729_v42  ;;  %v1735_v45 = vadd.s32 %v316_v15, %v314_v29  ;;  %1197 = vmatprep.subr.bf16.mxu1 %v1272_v36  ;;  %1171 = vmatprep.subr.bf16.mxu0 %v1272_v36 }
 0x18d   : > { %v515_v46 = vsel %vm507_vm4, %v1531_v5, -inf  ;;  %v516_v17 = vsel %vm508_vm5, %v1538_v6, -inf  ;;  %1205 = vmatpush3.bf16.msra.mxu1 %v1272_v36  ;;  %1172 = vmatpush3.bf16.msra.mxu0 %v1272_v36 }
 0x18e   : > { %528 = vmax.xlane.f32.xlu1 %v515_v46  ;;  %530 = vmax.xlane.f32.xlu0 %v516_v17  ;;  %vm2230_vm6 = vcmp.ge.s32.totalorder %v1735_v45, 3 }
 0x18f   : > { %v1744_v21 = vsel %vm2230_vm6, %v1584_v23, %v1643_v44  ;;  %1198 = vmatprep.subr.bf16.mxu1 %v1273_v37  ;;  %1173 = vmatprep.subr.bf16.mxu0 %v1273_v37 }
 0x190   : > { %vm509_vm7 = vcmp.lt.f32.partialorder %v1541_v7, %v1744_v21 }
 0x191   : > { %v517_v47 = vsel %vm509_vm7, %v1541_v7, -inf  ;;  %1206 = vmatpush3.bf16.msra.mxu1 %v1273_v37  ;;  %1174 = vmatpush3.bf16.msra.mxu0 %v1273_v37 }
 0x192   : > { %532 = vmax.xlane.f32.xlu1 %v517_v47 }
 0x1e9   : > { %v389_v48 = vpop.xlane.xlu0 %388 }
 0x1ea   : > { %v391_v56 = vcvt.f32.s32 %v389_v48 }
 0x1ec   : > { %v392_v18 = vshll.u32 %v391_v56, 16 }
 0x1ed   : > { %v401_v49 = vpop.xlane.xlu1 %400  ;;  %v413_v50 = vpop.xlane.xlu0 %412 }
 0x1ee   : > { %v403_v11 = vcvt.f32.s32 %v401_v49  ;;  %v415_v20 = vcvt.f32.s32 %v413_v50  ;;  %v328_v50 = vsub.s32 3, %v1657_v41 }
 0x1f0   : > { %v404_v16 = vshll.u32 %v403_v11, 16  ;;  %v416_v26 = vshll.u32 %v415_v20, 16  ;;  %v332_v11 = vsub.s32 3, %v1712_v33 }
 0x1f1   : > { %v425_v51 = vpop.xlane.xlu1 %424  ;;  %v387_v12 = vpop.xlane.xlu0 %386 }
 0x1f2   : > { %v390_v57 = vcvt.f32.s32 %v387_v12  ;;  %v427_v60 = vcvt.f32.s32 %v425_v51 }
 0x1f4   : > { %v393_v62 = vadd.s32 %v392_v18, %v390_v57  ;;  %v428_v34 = vshll.u32 %v427_v60, 16 }
 0x1f5   : > { %v399_v23 = vpop.xlane.xlu1 %398  ;;  %v411_v44 = vpop.xlane.xlu0 %410 }
 0x1f6   : > { %v402_v61 = vcvt.f32.s32 %v399_v23  ;;  %v414_v63 = vcvt.f32.s32 %v411_v44  ;;  %vm1751_vm11 = vcmp.ge.s32.totalorder %v393_v62, %v326_v25  ;;  %v329_v23 = vsub.s32 3, %v1670_v8 }
 0x1f7   : > { %vm494_vm15 = vmor %vm318_vm8, %vm1751_vm11 }
 0x1f8   : > { %v405_v35 = vadd.s32 %v404_v16, %v402_v61  ;;  %v417_v29 = vadd.s32 %v416_v26, %v414_v63 }
 0x1f9   : > { %v423_v52 = vpop.xlane.xlu1 %422  ;;  %v437_v55 = vpop.xlane.xlu0 %436 }
 0x1fa   : > { %v439_v10 = vcvt.f32.s32 %v437_v55  ;;  %v426_v22 = vcvt.f32.s32 %v423_v52  ;;  %vm487_vm13 = vcmp.ge.s32.totalorder %v405_v35, %v327_v38  ;;  %v330_v52 = vsub.s32 3, %v1698_v14 }
 0x1fb   : > { %vm488_vm14 = vcmp.ge.s32.totalorder %v417_v29, %v328_v50  ;;  %vm495_vm5 = vmor %vm319_vm9, %vm487_vm13 }
 0x1fc   : > { %v440_v46 = vshll.u32 %v439_v10, 16  ;;  %v429_v37 = vadd.s32 %v428_v34, %v426_v22  ;;  %vm496_vm6 = vmor %vm320_vm10, %vm488_vm14  ;;  %vm2257_vm14 = vcmp.ge.s32.totalorder %v1712_v33, 3  ;;  %v333_v33 = vsub.s32 3, %v1735_v45 }
 0x1fd   : > { %v449_v58 = vpop.xlane.xlu1 %448  ;;  %v461_v9 = vpop.xlane.xlu0 %460 }
 0x1fe   : > { %v451_v19 = vcvt.f32.s32 %v449_v58  ;;  %v463_v27 = vcvt.f32.s32 %v461_v9  ;;  %v331_v58 = vsub.s32 3, %v1710_v32  ;;  %vm489_vm1 = vcmp.ge.s32.totalorder %v429_v37, %v329_v23 }
 0x200   : > { %v452_v47 = vshll.u32 %v451_v19, 16  ;;  %v464_v51 = vshll.u32 %v463_v27, 16 }
 0x201   : > { %v473_v13 = vpop.xlane.xlu1 %472  ;;  %v435_v28 = vpop.xlane.xlu0 %434 }
 0x202   : > { %v438_v30 = vcvt.f32.s32 %v435_v28  ;;  %v475_v18 = vcvt.f32.s32 %v473_v13 }
 0x204   : > { %v441_v12 = vadd.s32 %v440_v46, %v438_v30  ;;  %v476_v14 = vshll.u32 %v475_v18, 16 }
 0x205   : > { %v447_v17 = vpop.xlane.xlu1 %446  ;;  %v459_v36 = vpop.xlane.xlu0 %458 }
 0x206   : > { %v450_v48 = vcvt.f32.s32 %v447_v17  ;;  %v462_v49 = vcvt.f32.s32 %v459_v36  ;;  %vm490_vm4 = vcmp.ge.s32.totalorder %v441_v12, %v330_v52 }
 0x207   : > { %vm1782_vm9 = vmor %vm322_vm0, %vm490_vm4 }
 0x208   : > { %v453_v44 = vadd.s32 %v452_v47, %v450_v48  ;;  %v465_v55 = vadd.s32 %v464_v51, %v462_v49 }
 0x209   : > { %v471_v56 = vpop.xlane.xlu1 %470  ;;  %v519_v57 = vpop.xlane.xlu0 %518 }
 0x20a   : > { %v1764_v9 = vsel %vm494_vm15, %v1663_v43, %v519_v57  ;;  %vm491_vm7 = vcmp.ge.s32.totalorder %v453_v44, %v331_v58  ;;  %vm492_vm3 = vcmp.ge.s32.totalorder %v465_v55, %v332_v11  ;;  %vm497_vm15 = vmor %vm321_vm12, %vm489_vm1  ;;  %v474_v20 = vcvt.f32.s32 %v471_v56 }
 0x20b   : > { %vm550_vm8 = vcmp.eq.f32.partialorder %v1514_v0, %v1764_v9  ;;  %vm542_vm11 = vcmp.gt.f32.partialorder %v1514_v0, %v1764_v9  ;;  %vm1802_vm0 = vmor %vm323_vm2, %vm491_vm7  ;;  %v1275_v9 = vld [vmem:[%s1503_s18] sm:$0xff] }
 0x20c   : > { %vm1796_vm12 = vmor %vm542_vm11, %vm550_vm8  ;;  %v477_v32 = vadd.s32 %v476_v14, %v474_v20 }
 0x20d   : > { %v521_v24 = vpop.xlane.xlu1 %520  ;;  %v523_v43 = vpop.xlane.xlu0 %522  ;;  %vm1811_vm1 = vmor %vm2257_vm14, %vm492_vm3 }
 0x20e   : > { %v1778_v40 = vsel %vm495_vm5, %v1676_v53, %v521_v24  ;;  %v1807_v60 = vsel %vm496_vm6, %v1682_v54, %v523_v43  ;;  %v1383_v54 = vmov 1.0|1.0  }
 0x20f   : > { %vm2233_vm10 = vcmp.eq.f32.partialorder %v1522_v2, %v1778_v40  ;;  %vm2232_vm13 = vcmp.gt.f32.partialorder %v1522_v2, %v1778_v40  ;;  %vm544_vm6 = vcmp.gt.f32.partialorder %v1517_v1, %v1807_v60  ;;  %vm552_vm4 = vcmp.eq.f32.partialorder %v1517_v1, %v1807_v60 }
 0x210   : > { %vm1132_vm2 = vmpackc.low %vm2233_vm10, %vm550_vm8 }
 0x211   : > { %v525_v62 = vpop.xlane.xlu1 %524  ;;  %1183 = vmatprep.mubr.msk.bf16.mxu1 %vm1132_vm2, %v1383_v54  ;;  %vm559_vm3 = vmor %vm2232_vm13, %vm2233_vm10  ;;  %vm493_vm2 = vcmp.ge.s32.totalorder %v477_v32, %v333_v33 }
 0x212   : > { %v1822_v63 = vsel %vm497_vm15, %v1694_v59, %v525_v62  ;;  %vm1124_vm15 = vmpackc.low %vm559_vm3, %vm1796_vm12 }
 0x213   : > { %vm2236_vm5 = vcmp.gt.f32.partialorder %v1525_v3, %v1822_v63  ;;  %vm2237_vm7 = vcmp.eq.f32.partialorder %v1525_v3, %v1822_v63  ;;  %v527_v59 = vpop.xlane.xlu0 %526  ;;  %1175 = vmatprep.mubr.msk.bf16.mxu0 %vm1124_vm15, %v1383_v54  ;;  %vm560_vm3 = vmor %vm544_vm6, %vm552_vm4 }
 0x214   : > { %vm561_vm14 = vmor %vm2236_vm5, %vm2237_vm7  ;;  %v1850_v10 = vsel %vm1782_vm9, %v1708_v31, %v527_v59  ;;  %v1274_v59 = vld [vmem:[%s1503_s18 + $0x10] sm:$0xff] }
 0x215   : > { %vm1134_vm12 = vmpackc.low %vm2237_vm7, %vm552_vm4  ;;  %vm2235_vm9 = vcmp.gt.f32.partialorder %v1528_v4, %v1850_v10  ;;  %vm2239_vm13 = vcmp.eq.f32.partialorder %v1528_v4, %v1850_v10 }
 0x216   : > { %1184 = vmatmul.mubr.msk.bf16.vlgmr.msra.gmra.mxu1 %vm1134_vm12, %v1383_v54  ;;  %vm1126_vm15 = vmpackc.low %vm561_vm14, %vm560_vm3  ;;  %vm2260_vm3 = vcmp.ge.s32.totalorder %v1735_v45, 3  ;;  %v1384_v45 = vmov 127  }
 0x217   : > { %v529_v13 = vpop.xlane.xlu1 %528  ;;  %v531_v31 = vpop.xlane.xlu0 %530  ;;  %1176 = vmatmul.mubr.msk.bf16.vlgmr.msra.gmra.mxu0 %vm1126_vm15, %v1383_v54  ;;  %vm501_vm10 = vmor %vm2260_vm3, %vm493_vm2  ;;  %1264 = vset.pattern.permute.xlu1 %v1384_v45 }
 0x218   : > { %v1871_v28 = vsel %vm1802_vm0, %v1723_v39, %v529_v13  ;;  %v1876_v16 = vsel %vm1811_vm1, %v1729_v42, %v531_v31  ;;  %vm562_vm1 = vmor %vm2235_vm9, %vm2239_vm13  ;;  %1265 = vset.pattern.permute.xlu0 %v1384_v45 }
 0x219   : > { %vm2234_vm14 = vcmp.gt.f32.partialorder %v1531_v5, %v1871_v28  ;;  %vm2238_vm12 = vcmp.eq.f32.partialorder %v1531_v5, %v1871_v28  ;;  %vm548_vm15 = vcmp.gt.f32.partialorder %v1538_v6, %v1876_v16  ;;  %vm556_vm2 = vcmp.eq.f32.partialorder %v1538_v6, %v1876_v16 }
 0x21a   : > { %vm563_vm0 = vmor %vm2234_vm14, %vm2238_vm12 }
 0x21b   : > { %v533_v39 = vpop.xlane.xlu1 %532  ;;  %vm1136_vm3 = vmpackc.low %vm2238_vm12, %vm2239_vm13 }
 0x21c   : > { %v1907_v42 = vsel %vm501_vm10, %v1744_v21, %v533_v39  ;;  %1187 = vmatprep.mubr.msk.bf16.mxu1 %vm1136_vm3, %v1383_v54  ;;  %vm1128_vm14 = vmpackc.low %vm563_vm0, %vm562_vm1 }
 0x21d   : > { %vm564_vm9 = vmor %vm548_vm15, %vm556_vm2  ;;  %vm2240_vm5 = vcmp.gt.f32.partialorder %v1541_v7, %v1907_v42  ;;  %vm557_vm7 = vcmp.eq.f32.partialorder %v1541_v7, %v1907_v42  ;;  %1179 = vmatprep.mubr.msk.bf16.mxu0 %vm1128_vm14, %v1383_v54 }
 0x21e   : > { %vm565_vm10 = vmor %vm2240_vm5, %vm557_vm7 }
 0x21f   : > { %vm1138_vm0 = vmpackc.low %vm557_vm7, %vm556_vm2 }
 0x220   : > { %1188 = vmatmul.mubr.msk.bf16.gmra.mxu1 %vm1138_vm0, %v1383_v54  ;;  %vm1130_vm1 = vmpackc.low %vm565_vm10, %vm564_vm9 }
 0x221   : > { %1180 = vmatmul.mubr.msk.bf16.gmra.mxu0 %vm1130_vm1, %v1383_v54 }
 0x2d6   : > { %v1185_v21 = vpop.f32.mrf.mxu1 }
 0x2d7   : > { %v1177_v22 = vpop.f32.mrf.mxu0 }
 0x2d8   : > { %v736_v19 = vpop.f32.mrf.mxu1  ;;  %v769_v25 = vsub.f32 %v1177_v22, %v1185_v21  ;;  %v1276_v22 = vld [vmem:[%s1503_s18 + $0x18] sm:$0xff] }
 0x2d9   : > { %v704_v26 = vpop.f32.mrf.mxu0 }
 0x2da   : > { %v1186_v27 = vpop.f32.mrf.mxu1  ;;  %v777_v30 = vsub.f32 3.0, %v769_v25  ;;  %v767_v34 = vsub.f32 %v704_v26, %v736_v19 }
 0x2db   : > { %v1178_v35 = vpop.f32.mrf.mxu0 }
 0x2dc   : > { %v1931_v38 = vpop.f32.mrf.mxu1  ;;  %v775_v15 = vsub.f32 3.0, %v767_v34  ;;  %v770_v29 = vsub.f32 %v1178_v35, %v1186_v27  ;;  %795 = vperm.xlu1 %1264, %v777_v30  }
 0x2dd   : > { %v707_v46 = vpop.f32.mrf.mxu0 }
 0x2de   : > { %v778_v17 = vsub.f32 3.0, %v770_v29  ;;  %v1934_v36 = vsub.f32 %v707_v46, %v1931_v38  ;;  %785 = vperm.xlu0 %1265, %v775_v15  }
 0x2e0   : > { %800 = vperm.xlu1 %1264, %v778_v17   ;;  %v1936_v37 = vpop.f32.mrf.mxu1  ;;  %v776_v48 = vsub.f32 3.0, %v1934_v36 }
 0x2e1   : > { %v1181_v47 = vpop.f32.mrf.mxu0 }
 0x2e2   : > { %v1940_v49 = vsub.f32 %v1181_v47, %v1936_v37  ;;  %v1942_v50 = vpop.f32.mrf.mxu1 }
 0x2e3   : > { %v720_v51 = vpop.f32.mrf.mxu0 }
 0x2e4   : > { %790 = vperm.xlu1 %1264, %v776_v48   ;;  %v1944_v12 = vpop.f32.mrf.mxu1  ;;  %v781_v44 = vsub.f32 3.0, %v1940_v49  ;;  %v1948_v52 = vsub.f32 %v720_v51, %v1942_v50 }
 0x2e5   : > { %v1182_v23 = vpop.f32.mrf.mxu0 }
 0x2e6   : > { %v1950_v55 = vpop.f32.mrf.mxu1  ;;  %v779_v57 = vsub.f32 3.0, %v1948_v52  ;;  %v1957_v11 = vsub.f32 %v1182_v23, %v1944_v12 }
 0x2e7   : > { %v723_v56 = vpop.f32.mrf.mxu0 }
 0x2e8   : > { %815 = vperm.xlu1 %1264, %v781_v44   ;;  %v1954_v58 = vsub.f32 %v723_v56, %v1950_v55  ;;  %v782_v24 = vsub.f32 3.0, %v1957_v11 }
 0x2ea   : > { %v780_v18 = vsub.f32 3.0, %v1954_v58 }
 0x2ec   : > { %805 = vperm.xlu1 %1264, %v779_v57  }
 0x2f0   : > { %810 = vperm.xlu1 %1264, %v780_v18  }
 0x2f4   : > { %820 = vperm.xlu1 %1264, %v782_v24  }
 0x357   : > { %v796_v43 = vpop.permute.xlu1 %795 }
 0x358   : > { %vm825_vm9 = vcmp.le.f32.partialorder %v1185_v21, %v796_v43  ;;  %v849_v20 = vmin.f32 %v1185_v21, %v796_v43 }
 0x359   : > { %vm833_vm14 = vmand %vm552_vm4, %vm825_vm9  ;;  %v786_v41 = vpop.permute.xlu0 %785 }
 0x35a   : > { %v857_v8 = vadd.f32 %v849_v20, %v769_v25  ;;  %vm823_vm3 = vcmp.le.f32.partialorder %v736_v19, %v786_v41  ;;  %v847_v53 = vmin.f32 %v736_v19, %v786_v41  ;;  %vm1967_vm10 = vmor %vm544_vm6, %vm833_vm14  ;;  %vm2265_vm6 = vcmp.eq.f32.partialorder %v1525_v3, %v1822_v63 }
 0x35b   : > { %vm831_vm0 = vmand %vm550_vm8, %vm823_vm3  ;;  %v801_v61 = vpop.permute.xlu1 %800 }
 0x35c   : > { %v855_v62 = vadd.f32 %v847_v53, %v767_v34  ;;  %vm826_vm4 = vcmp.le.f32.partialorder %v1186_v27, %v801_v61  ;;  %v850_v32 = vmin.f32 %v1186_v27, %v801_v61  ;;  %vm865_vm1 = vcmp.eq.f32.partialorder %v857_v8, 1.0  ;;  %vm1977_vm9 = vmor %vm542_vm11, %vm831_vm0 }
 0x35d   : > { %vm1984_vm14 = vmand %vm2265_vm6, %vm826_vm4  ;;  %vm905_vm8 = vcmp.eq.f32.partialorder %v857_v8, 2.0  ;;  %vm945_vm6 = vcmp.eq.f32.partialorder %v857_v8, 3.0  ;;  %v1281_v8 = vld [vmem:[%s1503_s18 + $0x28] sm:$0xff] }
 0x35e   : > { %v858_v60 = vadd.f32 %v850_v32, %v770_v29  ;;  %vm873_vm3 = vmand %vm1967_vm10, %vm865_vm1  ;;  %vm863_vm12 = vcmp.eq.f32.partialorder %v855_v62, 1.0  ;;  %vm2268_vm1 = vcmp.gt.f32.partialorder %v1525_v3, %v1822_v63  ;;  %vm903_vm5 = vcmp.eq.f32.partialorder %v855_v62, 2.0 }
 0x35f   : > { %v881_v33 = vsel %vm873_vm3, %v1274_v59, 0.0  ;;  %v791_v0 = vpop.permute.xlu1 %790  ;;  %vm871_vm11 = vmand %vm1977_vm9, %vm863_vm12 }
 0x360   : > { %891 = vadd.xlane.f32.xlu0 %v881_v33  ;;  %v879_v13 = vsel %vm871_vm11, %v1275_v9, 0.0  ;;  %vm913_vm0 = vmand %vm1967_vm10, %vm905_vm8  ;;  %vm866_vm4 = vcmp.eq.f32.partialorder %v858_v60, 1.0  ;;  %v848_v31 = vmin.f32 %v1931_v38, %v791_v0  ;;  %vm906_vm8 = vcmp.eq.f32.partialorder %v858_v60, 2.0 }
 0x361   : > { %887 = vadd.xlane.f32.xlu1 %v879_v13  ;;  %vm2002_vm3 = vmor %vm2268_vm1, %vm1984_vm14  ;;  %v921_v45 = vsel %vm913_vm0, %v1274_v59, 0.0  ;;  %vm824_vm11 = vcmp.le.f32.partialorder %v1931_v38, %v791_v0  ;;  %vm946_vm0 = vcmp.eq.f32.partialorder %v858_v60, 3.0 }
 0x362   : > { %vm874_vm12 = vmand %vm2002_vm3, %vm866_vm4  ;;  %v856_v3 = vadd.f32 %v848_v31, %v1934_v36  ;;  %vm2271_vm4 = vcmp.eq.f32.partialorder %v1522_v2, %v1778_v40 }
 0x363   : > { %v816_v21 = vpop.permute.xlu1 %815  ;;  %v882_v19 = vsel %vm874_vm12, %v1276_v22, 0.0  ;;  %vm953_vm13 = vmand %vm1967_vm10, %vm945_vm6  ;;  %vm943_vm6 = vcmp.eq.f32.partialorder %v855_v62, 3.0 }
 0x364   : > { %931 = vadd.xlane.f32.xlu0 %v921_v45  ;;  %vm914_vm14 = vmand %vm2002_vm3, %vm906_vm8  ;;  %v961_v25 = vsel %vm953_vm13, %v1274_v59, 0.0  ;;  %v853_v27 = vmin.f32 %v1936_v37, %v816_v21  ;;  %vm904_vm8 = vcmp.eq.f32.partialorder %v856_v3, 2.0 }
 0x365   : > { %893 = vadd.xlane.f32.xlu1 %v882_v19  ;;  %vm2018_vm1 = vmand %vm2271_vm4, %vm824_vm11  ;;  %v922_v30 = vsel %vm914_vm14, %v1276_v22, 0.0  ;;  %vm829_vm11 = vcmp.le.f32.partialorder %v1936_v37, %v816_v21  ;;  %vm864_vm14 = vcmp.eq.f32.partialorder %v856_v3, 1.0 }
 0x366   : > { %vm911_vm10 = vmand %vm1977_vm9, %vm903_vm5  ;;  %v2035_v15 = vadd.f32 %v853_v27, %v1940_v49  ;;  %vm2276_vm5 = vcmp.gt.f32.partialorder %v1522_v2, %v1778_v40  ;;  %v1277_v49 = vld [vmem:[%s1503_s18 + $0x8] sm:$0xff] }
 0x367   : > { %v806_v26 = vpop.permute.xlu1 %805  ;;  %vm954_vm12 = vmand %vm2002_vm3, %vm946_vm0  ;;  %v919_v35 = vsel %vm911_vm10, %v1275_v9, 0.0  ;;  %vm944_vm0 = vcmp.eq.f32.partialorder %v856_v3, 3.0 }
 0x368   : > { %971 = vadd.xlane.f32.xlu0 %v961_v25  ;;  %vm2030_vm13 = vmand %vm1977_vm9, %vm943_vm6  ;;  %v962_v29 = vsel %vm954_vm12, %v1276_v22, 0.0  ;;  %v851_v2 = vmin.f32 %v1942_v50, %v806_v26  ;;  %vm869_vm6 = vcmp.eq.f32.partialorder %v2035_v15, 1.0 }
 0x369   : > { %933 = vadd.xlane.f32.xlu1 %v922_v30  ;;  %vm2042_vm3 = vmor %vm2276_vm5, %vm2018_vm1  ;;  %v959_v37 = vsel %vm2030_vm13, %v1275_v9, 0.0  ;;  %vm2291_vm13 = vcmp.gt.f32.partialorder %v1541_v7, %v1907_v42  ;;  %v1278_v42 = vld [vmem:[%s1503_s18 + $0x30] sm:$0xff] }
 0x36a   : > { %vm2048_vm9 = vmand %vm2042_vm3, %vm904_vm8 }
 0x36b   : > { %v811_v34 = vpop.permute.xlu1 %810  ;;  %vm2055_vm4 = vmand %vm556_vm2, %vm829_vm11  ;;  %v920_v51 = vsel %vm2048_vm9, %v1277_v49, 0.0  ;;  %vm827_vm11 = vcmp.le.f32.partialorder %v1942_v50, %v806_v26  ;;  %vm909_vm9 = vcmp.eq.f32.partialorder %v2035_v15, 2.0 }
 0x36c   : > { %927 = vadd.xlane.f32.xlu0 %v919_v35  ;;  %vm2064_vm1 = vmand %vm2042_vm3, %vm864_vm14 }
 0x36d   : > { %973 = vadd.xlane.f32.xlu1 %v962_v29  ;;  %vm2075_vm2 = vmand %vm2042_vm3, %vm944_vm0  ;;  %v880_v57 = vsel %vm2064_vm1, %v1277_v49, 0.0  ;;  %vm2294_vm0 = vcmp.eq.f32.partialorder %v1528_v4, %v1850_v10 }
 0x36e   : > { %vm2090_vm8 = vmor %vm548_vm15, %vm2055_vm4  ;;  %vm828_vm15 = vcmp.le.f32.partialorder %v1950_v55, %v811_v34  ;;  %v960_v6 = vsel %vm2075_vm2, %v1277_v49, 0.0 }
 0x36f   : > { %v821_v40 = vpop.permute.xlu1 %820  ;;  %vm835_vm4 = vmand %vm2294_vm0, %vm827_vm11 }
 0x370   : > { %vm830_vm10 = vcmp.le.f32.partialorder %v1944_v12, %v821_v40  ;;  %v854_v48 = vmin.f32 %v1944_v12, %v821_v40  ;;  %967 = vadd.xlane.f32.xlu0 %v959_v37  ;;  %v852_v12 = vmin.f32 %v1950_v55, %v811_v34  ;;  %v1279_v55 = vld [vmem:[%s1503_s18 + $0x38] sm:$0xff] }
 0x371   : > { %vm838_vm12 = vmand %vm557_vm7, %vm830_vm10  ;;  %929 = vadd.xlane.f32.xlu1 %v920_v51  ;;  %vm2295_vm10 = vcmp.eq.f32.partialorder %v1531_v5, %v1871_v28 }
 0x372   : > { %v862_v44 = vadd.f32 %v854_v48, %v1957_v11  ;;  %vm2099_vm7 = vmand %vm2090_vm8, %vm869_vm6  ;;  %v859_v11 = vadd.f32 %v851_v2, %v1948_v52  ;;  %v860_v50 = vadd.f32 %v852_v12, %v1954_v58 }
 0x373   : > { %vm2110_vm5 = vmor %vm2291_vm13, %vm838_vm12  ;;  %v885_v52 = vsel %vm2099_vm7, %v1278_v42, 0.0 }
 0x374   : > { %889 = vadd.xlane.f32.xlu0 %v880_v57  ;;  %vm870_vm3 = vcmp.eq.f32.partialorder %v862_v44, 1.0  ;;  %vm910_vm1 = vcmp.eq.f32.partialorder %v862_v44, 2.0  ;;  %vm2124_vm2 = vmand %vm2295_vm10, %vm828_vm15  ;;  %vm867_vm12 = vcmp.eq.f32.partialorder %v859_v11, 1.0  ;;  %vm2298_vm15 = vcmp.gt.f32.partialorder %v1528_v4, %v1850_v10  ;;  %v1280_v4 = vld [vmem:[%s1503_s18 + $0x20] sm:$0xff] }
 0x375   : > { %969 = vadd.xlane.f32.xlu1 %v960_v6  ;;  %vm878_vm14 = vmand %vm2110_vm5, %vm870_vm3  ;;  %vm868_vm7 = vcmp.eq.f32.partialorder %v860_v50, 1.0 }
 0x376   : > { %v886_v24 = vsel %vm878_vm14, %v1279_v55, 0.0  ;;  %vm917_vm6 = vmand %vm2090_vm8, %vm909_vm9  ;;  %vm2301_vm14 = vcmp.gt.f32.partialorder %v1531_v5, %v1871_v28 }
 0x377   : > { %vm918_vm11 = vmand %vm2110_vm5, %vm910_vm1  ;;  %v925_v43 = vsel %vm917_vm6, %v1278_v42, 0.0  ;;  %vm908_vm1 = vcmp.eq.f32.partialorder %v860_v50, 2.0  ;;  %vm947_vm6 = vcmp.eq.f32.partialorder %v859_v11, 3.0 }
 0x378   : > { %899 = vadd.xlane.f32.xlu0 %v885_v52  ;;  %vm2139_vm13 = vmor %vm2298_vm15, %vm835_vm4  ;;  %v926_v20 = vsel %vm918_vm11, %v1279_v55, 0.0  ;;  %vm907_vm4 = vcmp.eq.f32.partialorder %v859_v11, 2.0 }
 0x379   : > { %901 = vadd.xlane.f32.xlu1 %v886_v24  ;;  %vm875_vm3 = vmand %vm2139_vm13, %vm867_vm12  ;;  %vm948_vm12 = vcmp.eq.f32.partialorder %v860_v50, 3.0 }
 0x37a   : > { %vm2150_vm9 = vmor %vm2301_vm14, %vm2124_vm2  ;;  %v883_v10 = vsel %vm875_vm3, %v1280_v4, 0.0  ;;  %vm950_vm3 = vcmp.eq.f32.partialorder %v862_v44, 3.0 }
 0x37b   : > { %vm876_vm0 = vmand %vm2150_vm9, %vm868_vm7  ;;  %vm949_vm7 = vcmp.eq.f32.partialorder %v2035_v15, 3.0 }
 0x37c   : > { %939 = vadd.xlane.f32.xlu0 %v925_v43  ;;  %v884_v53 = vsel %vm876_vm0, %v1281_v8, 0.0  ;;  %vm915_vm10 = vmand %vm2139_vm13, %vm907_vm4 }
 0x37d   : > { %941 = vadd.xlane.f32.xlu1 %v926_v20  ;;  %vm916_vm2 = vmand %vm2150_vm9, %vm908_vm1  ;;  %v923_v5 = vsel %vm915_vm10, %v1280_v4, 0.0 }
 0x37e   : > { %v924_v28 = vsel %vm916_vm2, %v1281_v8, 0.0  ;;  %vm955_vm11 = vmand %vm2139_vm13, %vm947_vm6  ;;  %vm983_vm13 = vcmask 7168  }
 0x37f   : > { %vm956_vm15 = vmand %vm2150_vm9, %vm948_vm12  ;;  %v963_v14 = vsel %vm955_vm11, %v1280_v4, 0.0  ;;  %vm992_vm9 = vcmask 15360  }
 0x380   : > { %895 = vadd.xlane.f32.xlu0 %v883_v10  ;;  %v964_v61 = vsel %vm956_vm15, %v1281_v8, 0.0  ;;  %vm957_vm14 = vmand %vm2090_vm8, %vm949_vm7  ;;  %vm1001_vm8 = vcmask 23552  }
 0x381   : > { %897 = vadd.xlane.f32.xlu1 %v884_v53  ;;  %vm958_vm0 = vmand %vm2110_vm5, %vm950_vm3  ;;  %v965_v62 = vsel %vm957_vm14, %v1278_v42, 0.0 }
 0x382   : > { %v966_v32 = vsel %vm958_vm0, %v1279_v55, 0.0 }
 0x384   : > { %935 = vadd.xlane.f32.xlu0 %v923_v5 }
 0x385   : > { %937 = vadd.xlane.f32.xlu1 %v924_v28 }
 0x388   : > { %975 = vadd.xlane.f32.xlu0 %v963_v14 }
 0x389   : > { %977 = vadd.xlane.f32.xlu1 %v964_v61 }
 0x38c   : > { %979 = vadd.xlane.f32.xlu0 %v965_v62 }
 0x38d   : > { %981 = vadd.xlane.f32.xlu1 %v966_v32 }
 0x3e9   : > { %v892_v54 = vpop.xlane.xlu0 %891 }
 0x3ea   : > { %v888_v1 = vpop.xlane.xlu1 %887 }
 0x3ed   : > { %v932_v60 = vpop.xlane.xlu0 %931 }
 0x3ee   : > { %v894_v59 = vpop.xlane.xlu1 %893  ;;  %v986_v33 = vsel %vm983_vm13, %v892_v54, %v932_v60 }
 0x3f1   : > { %v972_v0 = vpop.xlane.xlu0 %971 }
 0x3f2   : > { %v995_v9 = vsel %vm992_vm9, %v986_v33, %v972_v0  ;;  %v934_v13 = vpop.xlane.xlu1 %933 }
 0x3f3   : > { %1004 = vst.msk [vmem:[%s2176_s8 + $0x10] sm:$0xff] %vm1001_vm8, %v995_v9  ;;  %v987_v39 = vsel %vm983_vm13, %v894_v59, %v934_v13 }
 0x3f5   : > { %v928_v31 = vpop.xlane.xlu0 %927 }
 0x3f6   : > { %v974_v45 = vpop.xlane.xlu1 %973  ;;  %v984_v22 = vsel %vm983_vm13, %v888_v1, %v928_v31 }
 0x3f7   : > { %v996_v21 = vsel %vm992_vm9, %v987_v39, %v974_v45 }
 0x3f8   : > { %1005 = vst.msk [vmem:[%s2176_s8 + $0x18] sm:$0xff] %vm1001_vm8, %v996_v21 }
 0x3f9   : > { %v968_v19 = vpop.xlane.xlu0 %967 }
 0x3fa   : > { %v993_v3 = vsel %vm992_vm9, %v984_v22, %v968_v19  ;;  %v930_v63 = vpop.xlane.xlu1 %929 }
 0x3fb   : > { %1002 = vst.msk [vmem:[%s2176_s8] sm:$0xff] %vm1001_vm8, %v993_v3 }
 0x3fd   : > { %v890_v25 = vpop.xlane.xlu0 %889 }
 0x3fe   : > { %v985_v26 = vsel %vm983_vm13, %v890_v25, %v930_v63  ;;  %v970_v27 = vpop.xlane.xlu1 %969 }
 0x3ff   : > { %v994_v30 = vsel %vm992_vm9, %v985_v26, %v970_v27 }
 0x400   : > { %1003 = vst.msk [vmem:[%s2176_s8 + $0x8] sm:$0xff] %vm1001_vm8, %v994_v30 }
 0x401   : > { %v900_v34 = vpop.xlane.xlu0 %899 }
 0x402   : > { %v902_v35 = vpop.xlane.xlu1 %901 }
 0x405   : > { %v940_v38 = vpop.xlane.xlu0 %939 }
 0x406   : > { %v942_v15 = vpop.xlane.xlu1 %941  ;;  %v990_v51 = vsel %vm983_vm13, %v900_v34, %v940_v38 }
 0x407   : > { %v991_v12 = vsel %vm983_vm13, %v902_v35, %v942_v15 }
 0x409   : > { %v896_v29 = vpop.xlane.xlu0 %895 }
 0x40a   : > { %v898_v46 = vpop.xlane.xlu1 %897 }
 0x40d   : > { %v936_v17 = vpop.xlane.xlu0 %935 }
 0x40e   : > { %v938_v36 = vpop.xlane.xlu1 %937  ;;  %v988_v2 = vsel %vm983_vm13, %v896_v29, %v936_v17 }
 0x40f   : > { %v989_v37 = vsel %vm983_vm13, %v898_v46, %v938_v36 }
 0x411   : > { %v976_v40 = vpop.xlane.xlu0 %975 }
 0x412   : > { %v997_v47 = vsel %vm992_vm9, %v988_v2, %v976_v40  ;;  %v978_v48 = vpop.xlane.xlu1 %977 }
 0x413   : > { %1006 = vst.msk [vmem:[%s2176_s8 + $0x20] sm:$0xff] %vm1001_vm8, %v997_v47  ;;  %v998_v49 = vsel %vm992_vm9, %v989_v37, %v978_v48 }
 0x414   : > { %1007 = vst.msk [vmem:[%s2176_s8 + $0x28] sm:$0xff] %vm1001_vm8, %v998_v49 }
 0x415   : > { %v980_v23 = vpop.xlane.xlu0 %979 }
 0x416   : > { %v999_v44 = vsel %vm992_vm9, %v990_v51, %v980_v23  ;;  %v982_v56 = vpop.xlane.xlu1 %981 }
 0x417   : > { %1008 = vst.msk [vmem:[%s2176_s8 + $0x30] sm:$0xff] %vm1001_vm8, %v999_v44  ;;  %v1000_v57 = vsel %vm992_vm9, %v991_v12, %v982_v56 }
 0x418   : > { %1009 = vst.msk [vmem:[%s2176_s8 + $0x38] sm:$0xff] %vm1001_vm8, %v1000_v57 }
 0x419 PF: > { %p13_p7 = scmp.ge.s32.totalorder %s1447_s20, 4   ;;  %s2304_s9 = smov %s1366_s10 }
 0x41a   : > { %s2305_s10 = smov %s1370_s11  ;;  %s2306_s11 = smov %s1464_s28 }
 0x41b   : > { %s2307_s12 = smov %s1447_s20  ;;  %15 = sbr.rel (!%p13_p7) target bundleno = 4 (0x4), region = 72 }
 0x420   :  { %1032 = vsyncpa [#allocation3], 1 }
 0x421   :  { %1034 = vsyncpa [#allocation3 + $0x1], 1 }
 0x422   :  { %1035 = vsyncpa [#allocation5], 1 }

</bundles_post_ra>
